<compile_context>
chip_gen: v6e
topology: v6e:2x2x1
jax: 0.10.0
libtpu: 0.0.40
codegen_flags: <defaults>
</compile_context>

<pallas_src>
import functools

import jax
import jax.numpy as jnp
from jax.experimental import pallas as pl
from jax.experimental.pallas import tpu as pltpu


# ----------------------------------------------------------------------------
# Fused whole-network kernel
# ----------------------------------------------------------------------------
def _gnn3d_fused_kernel(x_ref, a_ref, fold_ref, unfold_ref, *rest,
                        n_layer, eps_gin, bn_eps, inv_count):
    # x_ref:      (n, k*d_in)      f32   activations, k channels concatenated along lanes
    # a_ref:      (n, n)           bf16  dense adjacency, A[dst, src] = #edges
    # fold_ref:   (k*d_out, d_out) f32   0/1: sums the k channel copies of each feature
    # unfold_ref: (d_out, k*d_out) f32   0/1: tiles a per-feature row across the k channels
    # per layer l (4 refs): w1_bd (k*d_prev, k*d_out) bf16, w2_bd (k*d_out, k*d_out) bf16,
    #                       gamma (1, d_out) f32, beta_kd (1, k*d_out) f32
    # last ref:   o_ref (n, k*d_out) f32
    o_ref = rest[-1]
    layer_refs = rest[:-1]

    a = a_ref[...]
    fold = fold_ref[...]
    unfold = unfold_ref[...]
    h = x_ref[...]
    prev = None

    for l in range(n_layer):                       # static unroll over layers
        w1 = layer_refs[4 * l][...]
        w2 = layer_refs[4 * l + 1][...]
        gamma = layer_refs[4 * l + 2][...]
        beta_kd = layer_refs[4 * l + 3][...]

        # --- GINConv: MLP((1+eps)*h + sum_{j->i} h_j); all k channels in one matmul each ---
        agg = jnp.dot(a, h.astype(jnp.bfloat16), preferred_element_type=jnp.float32)
        comb = (1.0 + eps_gin[l]) * h + agg
        z = jnp.maximum(
            jnp.dot(comb.astype(jnp.bfloat16), w1, preferred_element_type=jnp.float32), 0.0)
        y = jnp.dot(z.astype(jnp.bfloat16), w2,
                    preferred_element_type=jnp.float32)            # (n, k*d_out) f32

        # --- BatchNorm (training-mode stats over all (k, n) rows per feature), two-pass ---
        s_d = jnp.dot(jnp.sum(y, axis=0, keepdims=True), fold,
                      preferred_element_type=jnp.float32)          # (1, d_out)
        mean_d = s_d * inv_count
        mean_kd = jnp.dot(mean_d, unfold, preferred_element_type=jnp.float32)  # (1, k*d_out)
        c = y - mean_kd
        var_d = jnp.dot(jnp.sum(c * c, axis=0, keepdims=True), fold,
                        preferred_element_type=jnp.float32) * inv_count        # (1, d_out)
        scale_d = gamma * jax.lax.rsqrt(var_d + bn_eps)                        # (1, d_out)
        scale_kd = jnp.dot(scale_d, unfold, preferred_element_type=jnp.float32)

        # --- ReLU + residual ---
        act = jnp.maximum(c * scale_kd + beta_kd, 0.0)
        h = act if prev is None else act + prev    # reference: previous_x = 0 before layer 0
        prev = h

    o_ref[...] = h


# ----------------------------------------------------------------------------
# Module wrapper
# ----------------------------------------------------------------------------
def init_gnn3d_params(key, n_in, n_out, n_layer):
    params = []
    for i in range(n_layer):
        d_in = n_in if i == 0 else n_out
        k1, k2, key = jax.random.split(jax.random.fold_in(key, i), 3)
        params.append(dict(
            w1=(jax.random.normal(k1, (d_in, n_out), jnp.float32) / jnp.sqrt(d_in)),
            w2=(jax.random.normal(k2, (n_out, n_out), jnp.float32) / jnp.sqrt(n_out)),
            gamma=jnp.ones((n_out,), jnp.float32),
            beta=jnp.zeros((n_out,), jnp.float32),
            eps_gin=0.0,                           # GINConv eps init
        ))
    return params


def _dense_adjacency(edge_index, n):
    """A[dst, src] = #edges, via one-hot matmul (no TPU scatter)."""
    src_oh = jax.nn.one_hot(edge_index[0], n, dtype=jnp.float32)   # (E, n)
    dst_oh = jax.nn.one_hot(edge_index[1], n, dtype=jnp.float32)   # (E, n)
    return jnp.dot(dst_oh.T, src_oh)                               # (n, n) f32


def _all_zero_index_map(ndim):
    return lambda i: (0,) * ndim


def gnn3d_forward(x, edge_index, edge_attr, params, mask=None):
    """x: (n, k, d_in) f32; edge_index: (2, E) int32; edge_attr ignored (no edge features)."""
    del edge_attr
    # TODO(synk): only the mask=None path of the reference forward is implemented.
    assert mask is None
    n, k, d_in = x.shape
    n_layer = len(params)
    d_out = params[0]["w1"].shape[1]

    adj = _dense_adjacency(edge_index, n).astype(jnp.bfloat16)      # (n, n)

    eye_k = jnp.eye(k, dtype=jnp.float32)
    fold = jnp.tile(jnp.eye(d_out, dtype=jnp.float32), (k, 1))      # (k*d_out, d_out)
    unfold = fold.T                                                  # (d_out, k*d_out)

    flat_inputs = [x.reshape(n, k * d_in).astype(jnp.float32), adj, fold, unfold]
    eps_gin = []
    for p in params:
        flat_inputs.append(jnp.kron(eye_k, p["w1"]).astype(jnp.bfloat16))   # block-diag over k
        flat_inputs.append(jnp.kron(eye_k, p["w2"]).astype(jnp.bfloat16))
        flat_inputs.append(p["gamma"].reshape(1, d_out).astype(jnp.float32))
        flat_inputs.append(jnp.tile(p["beta"].reshape(1, d_out), (1, k)).astype(jnp.float32))
        eps_gin.append(float(p["eps_gin"]))

    kernel = functools.partial(
        _gnn3d_fused_kernel,
        n_layer=n_layer,
        eps_gin=tuple(eps_gin),
        bn_eps=1e-5,
        inv_count=1.0 / float(k * n),
    )

    in_specs = [pl.BlockSpec(a.shape, _all_zero_index_map(a.ndim)) for a in flat_inputs]

    out = pl.pallas_call(
        kernel,
        grid=(1,),
        in_specs=in_specs,
        out_specs=pl.BlockSpec((n, k * d_out), lambda i: (0, 0)),
        out_shape=jax.ShapeDtypeStruct((n, k * d_out), jnp.float32),
        compiler_params=pltpu.CompilerParams(dimension_semantics=("arbitrary",)),
    )(*flat_inputs)

    return out.reshape(n, k, d_out)                # (n, k, d_out)


# ----------------------------------------------------------------------------
# Pure-JAX reference (same bf16 cast points as the kernel) for correctness check
# ----------------------------------------------------------------------------
def gnn3d_reference(x, edge_index, params, bn_eps=1e-5):
    n, k, _ = x.shape
    adj = _dense_adjacency(edge_index, n).astype(jnp.bfloat16)
    h = x.astype(jnp.float32)                      # (n, k, d)
    prev = None
    for p in params:
        w1 = p["w1"].astype(jnp.bfloat16)
        w2 = p["w2"].astype(jnp.bfloat16)
        agg = jnp.einsum("ij,jkd->ikd", adj, h.astype(jnp.bfloat16),
                         preferred_element_type=jnp.float32)
        comb = (1.0 + float(p["eps_gin"])) * h + agg
        z = jnp.maximum(jnp.einsum("nkd,de->nke", comb.astype(jnp.bfloat16), w1,
                                   preferred_element_type=jnp.float32), 0.0)
        y = jnp.einsum("nkd,de->nke", z.astype(jnp.bfloat16), w2,
                       preferred_element_type=jnp.float32)
        mean = jnp.mean(y, axis=(0, 1), keepdims=True)
        var = jnp.mean((y - mean) ** 2, axis=(0, 1), keepdims=True)   # biased, training-mode
        yhat = (y - mean) * (p["gamma"] * jax.lax.rsqrt(var + bn_eps)) + p["beta"]
        act = jnp.maximum(yhat, 0.0)
        h = act if prev is None else act + prev
        prev = h
    return h


if __name__ == "__main__":
    n_nodes, k_chan, d_in, d_out, n_layer, n_edges = 16, 4, 8, 32, 3, 40

    key = jax.random.PRNGKey(0)
    kx, ke, kp = jax.random.split(key, 3)
    x = jax.random.normal(kx, (n_nodes, k_chan, d_in), jnp.float32)
    src = jax.random.randint(ke, (n_edges,), 0, n_nodes, jnp.int32)
    dst = jax.random.randint(jax.random.fold_in(ke, 1), (n_edges,), 0, n_nodes, jnp.int32)
    edge_index = jnp.stack([src, dst], axis=0)
    edge_attr = jnp.zeros((n_edges,), jnp.int32)   # unused ("assume no edge feature")

    params = init_gnn3d_params(kp, d_in, d_out, n_layer)

    out = gnn3d_forward(x, edge_index, edge_attr, params, mask=None)
    out = jax.block_until_ready(out)
    assert out.shape == (n_nodes, k_chan, d_out)
    assert bool(jnp.all(jnp.isfinite(out)))

    ref = jax.block_until_ready(gnn3d_reference(x, edge_index, params))
    max_err = float(jnp.max(jnp.abs(out - ref)))
    assert max_err < 5e-3, f"mismatch vs reference: max abs err {max_err}"

    print("KERNEL_OK")
</pallas_src>

<mosaic_0001>
module attributes {stable_mosaic.version = 11 : i64} {
  func.func @_gnn3d_fused_kernel(%arg0: i32, %arg1: memref<16x32xf32, #tpu.memory_space<vmem>>, %arg2: memref<16x16xbf16, #tpu.memory_space<vmem>>, %arg3: memref<128x32xf32, #tpu.memory_space<vmem>>, %arg4: memref<32x128xf32, #tpu.memory_space<vmem>>, %arg5: memref<32x128xbf16, #tpu.memory_space<vmem>>, %arg6: memref<128x128xbf16, #tpu.memory_space<vmem>>, %arg7: memref<1x32xf32, #tpu.memory_space<vmem>>, %arg8: memref<1x128xf32, #tpu.memory_space<vmem>>, %arg9: memref<128x128xbf16, #tpu.memory_space<vmem>>, %arg10: memref<128x128xbf16, #tpu.memory_space<vmem>>, %arg11: memref<1x32xf32, #tpu.memory_space<vmem>>, %arg12: memref<1x128xf32, #tpu.memory_space<vmem>>, %arg13: memref<128x128xbf16, #tpu.memory_space<vmem>>, %arg14: memref<128x128xbf16, #tpu.memory_space<vmem>>, %arg15: memref<1x32xf32, #tpu.memory_space<vmem>>, %arg16: memref<1x128xf32, #tpu.memory_space<vmem>>, %arg17: memref<16x128xf32, #tpu.memory_space<vmem>>) attributes {dimension_semantics = [#tpu.dimension_semantics<arbitrary>], iteration_bounds = array<i64: 1>, scalar_prefetch = 0 : i64, scratch_operands = 0 : i64, tpu.core_type = #tpu.core_type<tc>, window_params = [{pipeline_mode = #tpu.pipeline_mode<synchronous>, transform_indices = @transform_0, window_bounds = array<i64: 16, 32>}, {pipeline_mode = #tpu.pipeline_mode<synchronous>, transform_indices = @transform_1, window_bounds = array<i64: 16, 16>}, {pipeline_mode = #tpu.pipeline_mode<synchronous>, transform_indices = @transform_2, window_bounds = array<i64: 128, 32>}, {pipeline_mode = #tpu.pipeline_mode<synchronous>, transform_indices = @transform_3, window_bounds = array<i64: 32, 128>}, {pipeline_mode = #tpu.pipeline_mode<synchronous>, transform_indices = @transform_4, window_bounds = array<i64: 32, 128>}, {pipeline_mode = #tpu.pipeline_mode<synchronous>, transform_indices = @transform_5, window_bounds = array<i64: 128, 128>}, {pipeline_mode = #tpu.pipeline_mode<synchronous>, transform_indices = @transform_6, window_bounds = array<i64: 1, 32>}, {pipeline_mode = #tpu.pipeline_mode<synchronous>, transform_indices = @transform_7, window_bounds = array<i64: 1, 128>}, {pipeline_mode = #tpu.pipeline_mode<synchronous>, transform_indices = @transform_8, window_bounds = array<i64: 128, 128>}, {pipeline_mode = #tpu.pipeline_mode<synchronous>, transform_indices = @transform_9, window_bounds = array<i64: 128, 128>}, {pipeline_mode = #tpu.pipeline_mode<synchronous>, transform_indices = @transform_10, window_bounds = array<i64: 1, 32>}, {pipeline_mode = #tpu.pipeline_mode<synchronous>, transform_indices = @transform_11, window_bounds = array<i64: 1, 128>}, {pipeline_mode = #tpu.pipeline_mode<synchronous>, transform_indices = @transform_12, window_bounds = array<i64: 128, 128>}, {pipeline_mode = #tpu.pipeline_mode<synchronous>, transform_indices = @transform_13, window_bounds = array<i64: 128, 128>}, {pipeline_mode = #tpu.pipeline_mode<synchronous>, transform_indices = @transform_14, window_bounds = array<i64: 1, 32>}, {pipeline_mode = #tpu.pipeline_mode<synchronous>, transform_indices = @transform_15, window_bounds = array<i64: 1, 128>}, {pipeline_mode = #tpu.pipeline_mode<synchronous>, transform_indices = @transform_16, window_bounds = array<i64: 16, 128>}]} {
    %c0 = arith.constant 0 : index
    %c0_0 = arith.constant 0 : index
    %0 = vector.load %arg2[%c0, %c0_0] : memref<16x16xbf16, #tpu.memory_space<vmem>>, vector<16x16xbf16>
    %c0_1 = arith.constant 0 : index
    %c0_2 = arith.constant 0 : index
    %1 = vector.load %arg3[%c0_1, %c0_2] : memref<128x32xf32, #tpu.memory_space<vmem>>, vector<128x32xf32>
    %c0_3 = arith.constant 0 : index
    %c0_4 = arith.constant 0 : index
    %2 = vector.load %arg4[%c0_3, %c0_4] : memref<32x128xf32, #tpu.memory_space<vmem>>, vector<32x128xf32>
    %c0_5 = arith.constant 0 : index
    %c0_6 = arith.constant 0 : index
    %3 = vector.load %arg1[%c0_5, %c0_6] : memref<16x32xf32, #tpu.memory_space<vmem>>, vector<16x32xf32>
    %c0_7 = arith.constant 0 : index
    %c0_8 = arith.constant 0 : index
    %4 = vector.load %arg5[%c0_7, %c0_8] : memref<32x128xbf16, #tpu.memory_space<vmem>>, vector<32x128xbf16>
    %c0_9 = arith.constant 0 : index
    %c0_10 = arith.constant 0 : index
    %5 = vector.load %arg6[%c0_9, %c0_10] : memref<128x128xbf16, #tpu.memory_space<vmem>>, vector<128x128xbf16>
    %c0_11 = arith.constant 0 : index
    %c0_12 = arith.constant 0 : index
    %6 = vector.load %arg7[%c0_11, %c0_12] : memref<1x32xf32, #tpu.memory_space<vmem>>, vector<1x32xf32>
    %c0_13 = arith.constant 0 : index
    %c0_14 = arith.constant 0 : index
    %7 = vector.load %arg8[%c0_13, %c0_14] : memref<1x128xf32, #tpu.memory_space<vmem>>, vector<1x128xf32>
    %8 = arith.truncf %3 : vector<16x32xf32> to vector<16x32xbf16>
    %cst = arith.constant dense<0.000000e+00> : vector<16x32xf32>
    %9 = tpu.matmul %0, %8, %cst {dimension_numbers = #tpu.dot_dimension_numbers<[1], [0], [0], [1], [0, 0, 1, 1], [], []>} : vector<16x16xbf16>, vector<16x32xbf16>, vector<16x32xf32> -> vector<16x32xf32>
    %cst_15 = arith.constant 1.000000e+00 : f32
    %10 = vector.broadcast %cst_15 : f32 to vector<16x32xf32>
    %11 = arith.mulf %10, %3 : vector<16x32xf32>
    %12 = arith.addf %11, %9 : vector<16x32xf32>
    %13 = arith.truncf %12 : vector<16x32xf32> to vector<16x32xbf16>
    %cst_16 = arith.constant dense<0.000000e+00> : vector<16x128xf32>
    %14 = tpu.matmul %13, %4, %cst_16 {dimension_numbers = #tpu.dot_dimension_numbers<[1], [0], [0], [1], [0, 0, 1, 1], [], []>} : vector<16x32xbf16>, vector<32x128xbf16>, vector<16x128xf32> -> vector<16x128xf32>
    %cst_17 = arith.constant 0.000000e+00 : f32
    %15 = vector.broadcast %cst_17 : f32 to vector<16x128xf32>
    %16 = arith.maximumf %14, %15 : vector<16x128xf32>
    %17 = arith.truncf %16 : vector<16x128xf32> to vector<16x128xbf16>
    %cst_18 = arith.constant dense<0.000000e+00> : vector<16x128xf32>
    %18 = tpu.matmul %17, %5, %cst_18 {dimension_numbers = #tpu.dot_dimension_numbers<[1], [0], [0], [1], [0, 0, 1, 1], [], []>} : vector<16x128xbf16>, vector<128x128xbf16>, vector<16x128xf32> -> vector<16x128xf32>
    %cst_19 = arith.constant dense<0.000000e+00> : vector<128xf32>
    %19 = vector.multi_reduction <add>, %18, %cst_19 [0] : vector<16x128xf32> to vector<128xf32>
    %20 = vector.shape_cast %19 : vector<128xf32> to vector<1x128xf32>
    %cst_20 = arith.constant dense<0.000000e+00> : vector<1x32xf32>
    %21 = tpu.matmul %20, %1, %cst_20 {dimension_numbers = #tpu.dot_dimension_numbers<[1], [0], [0], [1], [0, 0, 1, 1], [], []>} : vector<1x128xf32>, vector<128x32xf32>, vector<1x32xf32> -> vector<1x32xf32>
    %cst_21 = arith.constant 1.562500e-02 : f32
    %22 = vector.broadcast %cst_21 : f32 to vector<1x32xf32>
    %23 = arith.mulf %21, %22 : vector<1x32xf32>
    %cst_22 = arith.constant dense<0.000000e+00> : vector<1x128xf32>
    %24 = tpu.matmul %23, %2, %cst_22 {dimension_numbers = #tpu.dot_dimension_numbers<[1], [0], [0], [1], [0, 0, 1, 1], [], []>} : vector<1x32xf32>, vector<32x128xf32>, vector<1x128xf32> -> vector<1x128xf32>
    %25 = vector.broadcast %24 : vector<1x128xf32> to vector<16x128xf32>
    %26 = arith.subf %18, %25 : vector<16x128xf32>
    %27 = arith.mulf %26, %26 : vector<16x128xf32>
    %cst_23 = arith.constant dense<0.000000e+00> : vector<128xf32>
    %28 = vector.multi_reduction <add>, %27, %cst_23 [0] : vector<16x128xf32> to vector<128xf32>
    %29 = vector.shape_cast %28 : vector<128xf32> to vector<1x128xf32>
    %cst_24 = arith.constant dense<0.000000e+00> : vector<1x32xf32>
    %30 = tpu.matmul %29, %1, %cst_24 {dimension_numbers = #tpu.dot_dimension_numbers<[1], [0], [0], [1], [0, 0, 1, 1], [], []>} : vector<1x128xf32>, vector<128x32xf32>, vector<1x32xf32> -> vector<1x32xf32>
    %cst_25 = arith.constant 1.562500e-02 : f32
    %31 = vector.broadcast %cst_25 : f32 to vector<1x32xf32>
    %32 = arith.mulf %30, %31 : vector<1x32xf32>
    %cst_26 = arith.constant 9.99999974E-6 : f32
    %33 = vector.broadcast %cst_26 : f32 to vector<1x32xf32>
    %34 = arith.addf %32, %33 : vector<1x32xf32>
    %35 = math.rsqrt %34 : vector<1x32xf32>
    %36 = arith.mulf %6, %35 : vector<1x32xf32>
    %cst_27 = arith.constant dense<0.000000e+00> : vector<1x128xf32>
    %37 = tpu.matmul %36, %2, %cst_27 {dimension_numbers = #tpu.dot_dimension_numbers<[1], [0], [0], [1], [0, 0, 1, 1], [], []>} : vector<1x32xf32>, vector<32x128xf32>, vector<1x128xf32> -> vector<1x128xf32>
    %38 = vector.broadcast %37 : vector<1x128xf32> to vector<16x128xf32>
    %39 = arith.mulf %26, %38 : vector<16x128xf32>
    %40 = vector.broadcast %7 : vector<1x128xf32> to vector<16x128xf32>
    %41 = arith.addf %39, %40 : vector<16x128xf32>
    %cst_28 = arith.constant 0.000000e+00 : f32
    %42 = vector.broadcast %cst_28 : f32 to vector<16x128xf32>
    %43 = arith.maximumf %41, %42 : vector<16x128xf32>
    %c0_29 = arith.constant 0 : index
    %c0_30 = arith.constant 0 : index
    %44 = vector.load %arg9[%c0_29, %c0_30] : memref<128x128xbf16, #tpu.memory_space<vmem>>, vector<128x128xbf16>
    %c0_31 = arith.constant 0 : index
    %c0_32 = arith.constant 0 : index
    %45 = vector.load %arg10[%c0_31, %c0_32] : memref<128x128xbf16, #tpu.memory_space<vmem>>, vector<128x128xbf16>
    %c0_33 = arith.constant 0 : index
    %c0_34 = arith.constant 0 : index
    %46 = vector.load %arg11[%c0_33, %c0_34] : memref<1x32xf32, #tpu.memory_space<vmem>>, vector<1x32xf32>
    %c0_35 = arith.constant 0 : index
    %c0_36 = arith.constant 0 : index
    %47 = vector.load %arg12[%c0_35, %c0_36] : memref<1x128xf32, #tpu.memory_space<vmem>>, vector<1x128xf32>
    %48 = arith.truncf %43 : vector<16x128xf32> to vector<16x128xbf16>
    %cst_37 = arith.constant dense<0.000000e+00> : vector<16x128xf32>
    %49 = tpu.matmul %0, %48, %cst_37 {dimension_numbers = #tpu.dot_dimension_numbers<[1], [0], [0], [1], [0, 0, 1, 1], [], []>} : vector<16x16xbf16>, vector<16x128xbf16>, vector<16x128xf32> -> vector<16x128xf32>
    %cst_38 = arith.constant 1.000000e+00 : f32
    %50 = vector.broadcast %cst_38 : f32 to vector<16x128xf32>
    %51 = arith.mulf %50, %43 : vector<16x128xf32>
    %52 = arith.addf %51, %49 : vector<16x128xf32>
    %53 = arith.truncf %52 : vector<16x128xf32> to vector<16x128xbf16>
    %cst_39 = arith.constant dense<0.000000e+00> : vector<16x128xf32>
    %54 = tpu.matmul %53, %44, %cst_39 {dimension_numbers = #tpu.dot_dimension_numbers<[1], [0], [0], [1], [0, 0, 1, 1], [], []>} : vector<16x128xbf16>, vector<128x128xbf16>, vector<16x128xf32> -> vector<16x128xf32>
    %cst_40 = arith.constant 0.000000e+00 : f32
    %55 = vector.broadcast %cst_40 : f32 to vector<16x128xf32>
    %56 = arith.maximumf %54, %55 : vector<16x128xf32>
    %57 = arith.truncf %56 : vector<16x128xf32> to vector<16x128xbf16>
    %cst_41 = arith.constant dense<0.000000e+00> : vector<16x128xf32>
    %58 = tpu.matmul %57, %45, %cst_41 {dimension_numbers = #tpu.dot_dimension_numbers<[1], [0], [0], [1], [0, 0, 1, 1], [], []>} : vector<16x128xbf16>, vector<128x128xbf16>, vector<16x128xf32> -> vector<16x128xf32>
    %cst_42 = arith.constant dense<0.000000e+00> : vector<128xf32>
    %59 = vector.multi_reduction <add>, %58, %cst_42 [0] : vector<16x128xf32> to vector<128xf32>
    %60 = vector.shape_cast %59 : vector<128xf32> to vector<1x128xf32>
    %cst_43 = arith.constant dense<0.000000e+00> : vector<1x32xf32>
    %61 = tpu.matmul %60, %1, %cst_43 {dimension_numbers = #tpu.dot_dimension_numbers<[1], [0], [0], [1], [0, 0, 1, 1], [], []>} : vector<1x128xf32>, vector<128x32xf32>, vector<1x32xf32> -> vector<1x32xf32>
    %cst_44 = arith.constant 1.562500e-02 : f32
    %62 = vector.broadcast %cst_44 : f32 to vector<1x32xf32>
    %63 = arith.mulf %61, %62 : vector<1x32xf32>
    %cst_45 = arith.constant dense<0.000000e+00> : vector<1x128xf32>
    %64 = tpu.matmul %63, %2, %cst_45 {dimension_numbers = #tpu.dot_dimension_numbers<[1], [0], [0], [1], [0, 0, 1, 1], [], []>} : vector<1x32xf32>, vector<32x128xf32>, vector<1x128xf32> -> vector<1x128xf32>
    %65 = vector.broadcast %64 : vector<1x128xf32> to vector<16x128xf32>
    %66 = arith.subf %58, %65 : vector<16x128xf32>
    %67 = arith.mulf %66, %66 : vector<16x128xf32>
    %cst_46 = arith.constant dense<0.000000e+00> : vector<128xf32>
    %68 = vector.multi_reduction <add>, %67, %cst_46 [0] : vector<16x128xf32> to vector<128xf32>
    %69 = vector.shape_cast %68 : vector<128xf32> to vector<1x128xf32>
    %cst_47 = arith.constant dense<0.000000e+00> : vector<1x32xf32>
    %70 = tpu.matmul %69, %1, %cst_47 {dimension_numbers = #tpu.dot_dimension_numbers<[1], [0], [0], [1], [0, 0, 1, 1], [], []>} : vector<1x128xf32>, vector<128x32xf32>, vector<1x32xf32> -> vector<1x32xf32>
    %cst_48 = arith.constant 1.562500e-02 : f32
    %71 = vector.broadcast %cst_48 : f32 to vector<1x32xf32>
    %72 = arith.mulf %70, %71 : vector<1x32xf32>
    %cst_49 = arith.constant 9.99999974E-6 : f32
    %73 = vector.broadcast %cst_49 : f32 to vector<1x32xf32>
    %74 = arith.addf %72, %73 : vector<1x32xf32>
    %75 = math.rsqrt %74 : vector<1x32xf32>
    %76 = arith.mulf %46, %75 : vector<1x32xf32>
    %cst_50 = arith.constant dense<0.000000e+00> : vector<1x128xf32>
    %77 = tpu.matmul %76, %2, %cst_50 {dimension_numbers = #tpu.dot_dimension_numbers<[1], [0], [0], [1], [0, 0, 1, 1], [], []>} : vector<1x32xf32>, vector<32x128xf32>, vector<1x128xf32> -> vector<1x128xf32>
    %78 = vector.broadcast %77 : vector<1x128xf32> to vector<16x128xf32>
    %79 = arith.mulf %66, %78 : vector<16x128xf32>
    %80 = vector.broadcast %47 : vector<1x128xf32> to vector<16x128xf32>
    %81 = arith.addf %79, %80 : vector<16x128xf32>
    %cst_51 = arith.constant 0.000000e+00 : f32
    %82 = vector.broadcast %cst_51 : f32 to vector<16x128xf32>
    %83 = arith.maximumf %81, %82 : vector<16x128xf32>
    %84 = arith.addf %83, %43 : vector<16x128xf32>
    %c0_52 = arith.constant 0 : index
    %c0_53 = arith.constant 0 : index
    %85 = vector.load %arg13[%c0_52, %c0_53] : memref<128x128xbf16, #tpu.memory_space<vmem>>, vector<128x128xbf16>
    %c0_54 = arith.constant 0 : index
    %c0_55 = arith.constant 0 : index
    %86 = vector.load %arg14[%c0_54, %c0_55] : memref<128x128xbf16, #tpu.memory_space<vmem>>, vector<128x128xbf16>
    %c0_56 = arith.constant 0 : index
    %c0_57 = arith.constant 0 : index
    %87 = vector.load %arg15[%c0_56, %c0_57] : memref<1x32xf32, #tpu.memory_space<vmem>>, vector<1x32xf32>
    %c0_58 = arith.constant 0 : index
    %c0_59 = arith.constant 0 : index
    %88 = vector.load %arg16[%c0_58, %c0_59] : memref<1x128xf32, #tpu.memory_space<vmem>>, vector<1x128xf32>
    %89 = arith.truncf %84 : vector<16x128xf32> to vector<16x128xbf16>
    %cst_60 = arith.constant dense<0.000000e+00> : vector<16x128xf32>
    %90 = tpu.matmul %0, %89, %cst_60 {dimension_numbers = #tpu.dot_dimension_numbers<[1], [0], [0], [1], [0, 0, 1, 1], [], []>} : vector<16x16xbf16>, vector<16x128xbf16>, vector<16x128xf32> -> vector<16x128xf32>
    %cst_61 = arith.constant 1.000000e+00 : f32
    %91 = vector.broadcast %cst_61 : f32 to vector<16x128xf32>
    %92 = arith.mulf %91, %84 : vector<16x128xf32>
    %93 = arith.addf %92, %90 : vector<16x128xf32>
    %94 = arith.truncf %93 : vector<16x128xf32> to vector<16x128xbf16>
    %cst_62 = arith.constant dense<0.000000e+00> : vector<16x128xf32>
    %95 = tpu.matmul %94, %85, %cst_62 {dimension_numbers = #tpu.dot_dimension_numbers<[1], [0], [0], [1], [0, 0, 1, 1], [], []>} : vector<16x128xbf16>, vector<128x128xbf16>, vector<16x128xf32> -> vector<16x128xf32>
    %cst_63 = arith.constant 0.000000e+00 : f32
    %96 = vector.broadcast %cst_63 : f32 to vector<16x128xf32>
    %97 = arith.maximumf %95, %96 : vector<16x128xf32>
    %98 = arith.truncf %97 : vector<16x128xf32> to vector<16x128xbf16>
    %cst_64 = arith.constant dense<0.000000e+00> : vector<16x128xf32>
    %99 = tpu.matmul %98, %86, %cst_64 {dimension_numbers = #tpu.dot_dimension_numbers<[1], [0], [0], [1], [0, 0, 1, 1], [], []>} : vector<16x128xbf16>, vector<128x128xbf16>, vector<16x128xf32> -> vector<16x128xf32>
    %cst_65 = arith.constant dense<0.000000e+00> : vector<128xf32>
    %100 = vector.multi_reduction <add>, %99, %cst_65 [0] : vector<16x128xf32> to vector<128xf32>
    %101 = vector.shape_cast %100 : vector<128xf32> to vector<1x128xf32>
    %cst_66 = arith.constant dense<0.000000e+00> : vector<1x32xf32>
    %102 = tpu.matmul %101, %1, %cst_66 {dimension_numbers = #tpu.dot_dimension_numbers<[1], [0], [0], [1], [0, 0, 1, 1], [], []>} : vector<1x128xf32>, vector<128x32xf32>, vector<1x32xf32> -> vector<1x32xf32>
    %cst_67 = arith.constant 1.562500e-02 : f32
    %103 = vector.broadcast %cst_67 : f32 to vector<1x32xf32>
    %104 = arith.mulf %102, %103 : vector<1x32xf32>
    %cst_68 = arith.constant dense<0.000000e+00> : vector<1x128xf32>
    %105 = tpu.matmul %104, %2, %cst_68 {dimension_numbers = #tpu.dot_dimension_numbers<[1], [0], [0], [1], [0, 0, 1, 1], [], []>} : vector<1x32xf32>, vector<32x128xf32>, vector<1x128xf32> -> vector<1x128xf32>
    %106 = vector.broadcast %105 : vector<1x128xf32> to vector<16x128xf32>
    %107 = arith.subf %99, %106 : vector<16x128xf32>
    %108 = arith.mulf %107, %107 : vector<16x128xf32>
    %cst_69 = arith.constant dense<0.000000e+00> : vector<128xf32>
    %109 = vector.multi_reduction <add>, %108, %cst_69 [0] : vector<16x128xf32> to vector<128xf32>
    %110 = vector.shape_cast %109 : vector<128xf32> to vector<1x128xf32>
    %cst_70 = arith.constant dense<0.000000e+00> : vector<1x32xf32>
    %111 = tpu.matmul %110, %1, %cst_70 {dimension_numbers = #tpu.dot_dimension_numbers<[1], [0], [0], [1], [0, 0, 1, 1], [], []>} : vector<1x128xf32>, vector<128x32xf32>, vector<1x32xf32> -> vector<1x32xf32>
    %cst_71 = arith.constant 1.562500e-02 : f32
    %112 = vector.broadcast %cst_71 : f32 to vector<1x32xf32>
    %113 = arith.mulf %111, %112 : vector<1x32xf32>
    %cst_72 = arith.constant 9.99999974E-6 : f32
    %114 = vector.broadcast %cst_72 : f32 to vector<1x32xf32>
    %115 = arith.addf %113, %114 : vector<1x32xf32>
    %116 = math.rsqrt %115 : vector<1x32xf32>
    %117 = arith.mulf %87, %116 : vector<1x32xf32>
    %cst_73 = arith.constant dense<0.000000e+00> : vector<1x128xf32>
    %118 = tpu.matmul %117, %2, %cst_73 {dimension_numbers = #tpu.dot_dimension_numbers<[1], [0], [0], [1], [0, 0, 1, 1], [], []>} : vector<1x32xf32>, vector<32x128xf32>, vector<1x128xf32> -> vector<1x128xf32>
    %119 = vector.broadcast %118 : vector<1x128xf32> to vector<16x128xf32>
    %120 = arith.mulf %107, %119 : vector<16x128xf32>
    %121 = vector.broadcast %88 : vector<1x128xf32> to vector<16x128xf32>
    %122 = arith.addf %120, %121 : vector<16x128xf32>
    %cst_74 = arith.constant 0.000000e+00 : f32
    %123 = vector.broadcast %cst_74 : f32 to vector<16x128xf32>
    %124 = arith.maximumf %122, %123 : vector<16x128xf32>
    %125 = arith.addf %124, %84 : vector<16x128xf32>
    %c0_75 = arith.constant 0 : index
    %c0_76 = arith.constant 0 : index
    %126 = vector.load %arg17[%c0_75, %c0_76] : memref<16x128xf32, #tpu.memory_space<vmem>>, vector<16x128xf32>
    tpu.vector_store %arg17[%c0_75, %c0_76], %125 {strides = array<i32>} : memref<16x128xf32, #tpu.memory_space<vmem>>, vector<16x128xf32>,
    return
  }
  func.func @transform_0(%arg0: i32) -> (i32, i32) {
    %c0_i32 = arith.constant 0 : i32
    %c0_i32_0 = arith.constant 0 : i32
    %c0_i32_1 = arith.constant 0 : i32
    return %c0_i32, %c0_i32_0 : i32, i32
  }
  func.func @transform_1(%arg0: i32) -> (i32, i32) {
    %c0_i32 = arith.constant 0 : i32
    %c0_i32_0 = arith.constant 0 : i32
    %c0_i32_1 = arith.constant 0 : i32
    return %c0_i32, %c0_i32_0 : i32, i32
  }
  func.func @transform_2(%arg0: i32) -> (i32, i32) {
    %c0_i32 = arith.constant 0 : i32
    %c0_i32_0 = arith.constant 0 : i32
    %c0_i32_1 = arith.constant 0 : i32
    return %c0_i32, %c0_i32_0 : i32, i32
  }
  func.func @transform_3(%arg0: i32) -> (i32, i32) {
    %c0_i32 = arith.constant 0 : i32
    %c0_i32_0 = arith.constant 0 : i32
    %c0_i32_1 = arith.constant 0 : i32
    return %c0_i32, %c0_i32_0 : i32, i32
  }
  func.func @transform_4(%arg0: i32) -> (i32, i32) {
    %c0_i32 = arith.constant 0 : i32
    %c0_i32_0 = arith.constant 0 : i32
    %c0_i32_1 = arith.constant 0 : i32
    return %c0_i32, %c0_i32_0 : i32, i32
  }
  func.func @transform_5(%arg0: i32) -> (i32, i32) {
    %c0_i32 = arith.constant 0 : i32
    %c0_i32_0 = arith.constant 0 : i32
    %c0_i32_1 = arith.constant 0 : i32
    return %c0_i32, %c0_i32_0 : i32, i32
  }
  func.func @transform_6(%arg0: i32) -> (i32, i32) {
    %c0_i32 = arith.constant 0 : i32
    %c0_i32_0 = arith.constant 0 : i32
    %c0_i32_1 = arith.constant 0 : i32
    return %c0_i32, %c0_i32_0 : i32, i32
  }
  func.func @transform_7(%arg0: i32) -> (i32, i32) {
    %c0_i32 = arith.constant 0 : i32
    %c0_i32_0 = arith.constant 0 : i32
    %c0_i32_1 = arith.constant 0 : i32
    return %c0_i32, %c0_i32_0 : i32, i32
  }
  func.func @transform_8(%arg0: i32) -> (i32, i32) {
    %c0_i32 = arith.constant 0 : i32
    %c0_i32_0 = arith.constant 0 : i32
    %c0_i32_1 = arith.constant 0 : i32
    return %c0_i32, %c0_i32_0 : i32, i32
  }
  func.func @transform_9(%arg0: i32) -> (i32, i32) {
    %c0_i32 = arith.constant 0 : i32
    %c0_i32_0 = arith.constant 0 : i32
    %c0_i32_1 = arith.constant 0 : i32
    return %c0_i32, %c0_i32_0 : i32, i32
  }
  func.func @transform_10(%arg0: i32) -> (i32, i32) {
    %c0_i32 = arith.constant 0 : i32
    %c0_i32_0 = arith.constant 0 : i32
    %c0_i32_1 = arith.constant 0 : i32
    return %c0_i32, %c0_i32_0 : i32, i32
  }
  func.func @transform_11(%arg0: i32) -> (i32, i32) {
    %c0_i32 = arith.constant 0 : i32
    %c0_i32_0 = arith.constant 0 : i32
    %c0_i32_1 = arith.constant 0 : i32
    return %c0_i32, %c0_i32_0 : i32, i32
  }
  func.func @transform_12(%arg0: i32) -> (i32, i32) {
    %c0_i32 = arith.constant 0 : i32
    %c0_i32_0 = arith.constant 0 : i32
    %c0_i32_1 = arith.constant 0 : i32
    return %c0_i32, %c0_i32_0 : i32, i32
  }
  func.func @transform_13(%arg0: i32) -> (i32, i32) {
    %c0_i32 = arith.constant 0 : i32
    %c0_i32_0 = arith.constant 0 : i32
    %c0_i32_1 = arith.constant 0 : i32
    return %c0_i32, %c0_i32_0 : i32, i32
  }
  func.func @transform_14(%arg0: i32) -> (i32, i32) {
    %c0_i32 = arith.constant 0 : i32
    %c0_i32_0 = arith.constant 0 : i32
    %c0_i32_1 = arith.constant 0 : i32
    return %c0_i32, %c0_i32_0 : i32, i32
  }
  func.func @transform_15(%arg0: i32) -> (i32, i32) {
    %c0_i32 = arith.constant 0 : i32
    %c0_i32_0 = arith.constant 0 : i32
    %c0_i32_1 = arith.constant 0 : i32
    return %c0_i32, %c0_i32_0 : i32, i32
  }
  func.func @transform_16(%arg0: i32) -> (i32, i32) {
    %c0_i32 = arith.constant 0 : i32
    %c0_i32_0 = arith.constant 0 : i32
    %c0_i32_1 = arith.constant 0 : i32
    return %c0_i32, %c0_i32_0 : i32, i32
  }
}

</mosaic_0001>

<bundles_post_ra>
// kernel: tpu_custom_call.1
= control target key start
LH: loop header
LB: loop body
LE: loop exit
PB: predicated region body
PF: predicated region fallthrough
CT: control target
= control target key end

     0   :  { %s3459_s0 = inlined_call_operand.hbm [shape: f32[16,32], index: 0, kind: input, shape index: {}]   ;;  %s3460_s1 = inlined_call_operand.hbm [shape: bf16[16,16], index: 1, kind: input, shape index: {}]   ;;  %s3461_s2 = inlined_call_operand.vmem [shape: f32[128,32], index: 2, kind: input, shape index: {}]   ;;  %s3462_s3 = inlined_call_operand.vmem [shape: f32[32,128], index: 3, kind: input, shape index: {}]   ;;  %s3463_s4 = inlined_call_operand.hbm [shape: bf16[32,128], index: 4, kind: input, shape index: {}]   ;;  %s3464_s5 = inlined_call_operand.vmem [shape: bf16[128,128], index: 5, kind: input, shape index: {}]   ;;  %s3465_s6 = inlined_call_operand.vmem [shape: f32[1,32], index: 6, kind: input, shape index: {}]   ;;  %s3466_s7 = inlined_call_operand.vmem [shape: f32[1,128], index: 7, kind: input, shape index: {}]   ;;  %s3467_s8 = inlined_call_operand.vmem [shape: bf16[128,128], index: 8, kind: input, shape index: {}]   ;;  %s3468_s9 = inlined_call_operand.hbm [shape: bf16[128,128], index: 9, kind: input, shape index: {}]   ;;  %s3469_s10 = inlined_call_operand.vmem [shape: f32[1,32], index: 10, kind: input, shape index: {}]   ;;  %s3470_s11 = inlined_call_operand.vmem [shape: f32[1,128], index: 11, kind: input, shape index: {}]   ;;  %s3471_s12 = inlined_call_operand.hbm [shape: bf16[128,128], index: 12, kind: input, shape index: {}]   ;;  %s3472_s13 = inlined_call_operand.hbm [shape: bf16[128,128], index: 13, kind: input, shape index: {}]   ;;  %s3473_s14 = inlined_call_operand.vmem [shape: f32[1,32], index: 14, kind: input, shape index: {}]   ;;  %s3474_s15 = inlined_call_operand.vmem [shape: f32[1,128], index: 15, kind: input, shape index: {}]   ;;  %s3475_s16 = inlined_call_operand.hbm [shape: f32[16,128], index: 16, kind: output, shape index: {}]  }
   0x1   :  { %3476 = sst [smem:[#allocation19_spill]] %s3459_s0 }
   0x2   :  { %21 = vsyncpa [#allocation3], 0 }
   0x3   :  { %22 = vsyncpa [#allocation6], 0 }
   0x4   :  { %23 = vsyncpa [#allocation9], 0 }
   0x5   :  { %24 = vsyncpa [#allocation12], 0 }
   0x6   :  { %25 = vsyncpa [#allocation4], 0  ;;  %s2775_s21 = smov [#allocation5]  }
   0x7   :  { %s43_s22 = sshll.u32 %s2775_s21, 4  ;;  %s44_s22 = int_to_ptr.vmem [resolvable:$true] %s43_s22 }
   0x8   :  { %s2633_s23 = scalar_lea.vmem %s44_s22, 128  ;;  %p2638_p1 = scmp.lt.s32.totalorder %s44_s22, %s44_s22 }
   0x9   :  { %p2634_p0 = scmp.ne.s32.totalorder %s44_s22, %s2633_s23  ;;  %p2639_p2 = scmp.lt.s32.totalorder %s2633_s23, %s2633_s23 }
   0xb   :  { %p2640_p3 = por %p2639_p2, %p2638_p1 }
   0xd   :  { %p2641_p4 = pnand %p2640_p3, %p2634_p0 }
   0xf   :  { %2644 = shalt.err (!%p2641_p4)
}
  0x10   :  { %s2776_s24 = smov 64   ;;  %s2777_s25 = smov 4  }
  0x11   :  { %49 = dma.hbm_to_vmem [thread:$0]  %s3460_s1, 128, %s44_s22, [#allocation6], %s2776_s24, %s2776_s24, %s2777_s25  }
  0x12   :  { %s2778_s28 = smov [#allocation8]   ;;  %s2779_s30 = smov [#allocation2]  }
  0x13   :  { %s79_s29 = sshll.u32 %s2778_s28, 4  ;;  %s31_s0 = sshll.u32 %s2779_s30, 4  ;;  %s80_s29 = int_to_ptr.vmem [resolvable:$true] %s79_s29  ;;  %s32_s0 = int_to_ptr.vmem [resolvable:$true] %s31_s0 }
  0x14   :  { %s2653_s17 = scalar_lea.vmem %s80_s29, 1024  ;;  %p2658_p6 = scmp.lt.s32.totalorder %s80_s29, %s80_s29 }
  0x15   :  { %p2654_p5 = scmp.ne.s32.totalorder %s80_s29, %s2653_s17  ;;  %p2659_p7 = scmp.lt.s32.totalorder %s2653_s17, %s2653_s17 }
  0x17   :  { %p2660_p8 = por %p2659_p7, %p2658_p6 }
  0x19   :  { %p2661_p9 = pnand %p2660_p8, %p2654_p5 }
  0x1b   :  { %2664 = shalt.err (!%p2661_p9)
}
  0x1c   :  { %85 = dma.hbm_to_vmem [thread:$0]  %s3468_s9, 1024, %s80_s29, [#allocation9], %s2776_s24, %s2776_s24, %s2777_s25  }
  0x1d   :  { %s2673_s1 = scalar_lea.vmem %s32_s0, 256  ;;  %p2678_p11 = scmp.lt.s32.totalorder %s32_s0, %s32_s0 }
  0x1e   :  { %p2674_p10 = scmp.ne.s32.totalorder %s32_s0, %s2673_s1  ;;  %p2679_p12 = scmp.lt.s32.totalorder %s2673_s1, %s2673_s1 }
  0x20   :  { %p2680_p13 = por %p2679_p12, %p2678_p11 }
  0x22   :  { %p2681_p0 = pnand %p2680_p13, %p2674_p10 }
  0x24   :  { %2684 = shalt.err (!%p2681_p0)
}
  0x25   :  { %s2780_s20 = smov 128   ;;  %s2781_s21 = smov 8  }
  0x26   :  { %s3477_s26 = sld [smem:[#allocation19_spill]]  ;;  %s2782_s27 = smov [#allocation7]  }
  0x27   :  { %s59_s28 = sshll.u32 %s2782_s27, 4  ;;  %s2783_s9 = smov [#allocation10]   ;;  %s60_s28 = int_to_ptr.vmem [resolvable:$true] %s59_s28 }
  0x28   :  { %s95_s29 = sshll.u32 %s2783_s9, 4  ;;  %s2693_s30 = scalar_lea.vmem %s60_s28, 256  ;;  %s96_s29 = int_to_ptr.vmem [resolvable:$true] %s95_s29 }
  0x29   :  { %p2694_p1 = scmp.ne.s32.totalorder %s60_s28, %s2693_s30  ;;  %p2698_p2 = scmp.lt.s32.totalorder %s60_s28, %s60_s28 }
  0x2a   :  { %p2699_p3 = scmp.lt.s32.totalorder %s2693_s30, %s2693_s30 }
  0x2c   :  { %37 = dma.hbm_to_vmem [thread:$0]  %s3477_s26, 256, %s32_s0, [#allocation3], %s2780_s20, %s2780_s20, %s2781_s21  }
  0x2d   :  { %p2700_p4 = por %p2699_p3, %p2698_p2 }
  0x2f   :  { %p2701_p5 = pnand %p2700_p4, %p2694_p1 }
  0x31   :  { %2704 = shalt.err (!%p2701_p5)
}
  0x32   :  { %65 = dma.hbm_to_vmem [thread:$0]  %s3463_s4, 256, %s60_s28, [#allocation6], %s2776_s24, %s2776_s24, %s2777_s25  }
  0x33   :  { %s2713_s0 = scalar_lea.vmem %s96_s29, 1024  ;;  %p2718_p7 = scmp.lt.s32.totalorder %s96_s29, %s96_s29 }
  0x34   :  { %p2714_p6 = scmp.ne.s32.totalorder %s96_s29, %s2713_s0  ;;  %p2719_p8 = scmp.lt.s32.totalorder %s2713_s0, %s2713_s0 }
  0x36   :  { %p2720_p9 = por %p2719_p8, %p2718_p7 }
  0x38   :  { %p2721_p10 = pnand %p2720_p9, %p2714_p6 }
  0x3a   :  { %2724 = shalt.err (!%p2721_p10)
}
  0x3b   :  { %101 = dma.hbm_to_vmem [thread:$0]  %s3471_s12, 1024, %s96_s29, [#allocation9], %s2776_s24, %s2776_s24, %s2777_s25  }
  0x3c   :  { %s2784_s22 = smov [#allocation11]  }
  0x3d   :  { %s107_s23 = sshll.u32 %s2784_s22, 4  ;;  %s108_s23 = int_to_ptr.vmem [resolvable:$true] %s107_s23 }
  0x3e   :  { %s2733_s26 = scalar_lea.vmem %s108_s23, 1024  ;;  %p2738_p12 = scmp.lt.s32.totalorder %s108_s23, %s108_s23 }
  0x3f   :  { %p2734_p11 = scmp.ne.s32.totalorder %s108_s23, %s2733_s26  ;;  %p2739_p13 = scmp.lt.s32.totalorder %s2733_s26, %s2733_s26 }
  0x41   :  { %p2740_p0 = por %p2739_p13, %p2738_p12 }
  0x43   :  { %p2741_p1 = pnand %p2740_p0, %p2734_p11 }
  0x45   :  { %2744 = shalt.err (!%p2741_p1)
}
  0x46   :  { %113 = dma.hbm_to_vmem [thread:$0]  %s3472_s13, 1024, %s108_s23, [#allocation12], %s2776_s24, %s2776_s24, %s2777_s25  }
  0x47   :  { %2765 = dma.done.wait [#allocation3], 256  }
  0x48   :  { %2766 = vsyncadd [#allocation3], 4294967040 }
  0x49   :  { %2767 = dma.done.wait [#allocation6], 384  }
  0x4a   :  { %2768 = vsyncadd [#allocation6], 4294966912 }
  0x4b   :  { %2769 = dma.done.wait [#allocation9], 2048  }
  0x4c   :  { %2770 = vsyncadd [#allocation9], 4294965248 }
  0x4d   :  { %2771 = dma.done.wait [#allocation12], 1024  }
  0x4e   :  { %2772 = vsyncadd [#allocation12], 4294966272  ;;  %v2785_v0 = vmov 0.0   ;;  %vm2786_vm0 = vmmov 0   ;;  %v159_v1 = vld [vmem:[#allocation2] sm:$0xff]  ;;  %v160_v2 = vld [vmem:[#allocation2 + $0x8] sm:$0xff]  ;;  %v537_v63 = vlaneseq }
  0x4f   :  { %2161 = vmatprep.subr.bf16.mxu0 %v2785_v0  ;;  %2163 = vmatprep.mubr.msk.bf16.mxu0 %vm2786_vm0, %v2785_v0  ;;  %v183_v3 = vpack.c.bf16 %v160_v2, %v159_v1  ;;  %v2915_v4 = vld [vmem:[#allocation5] sm:$0xff]   ;;  %vm189_vm1 = vcmask 130048   ;;  %v2577_v5 = vld [vmem:[#allocation7 + $0x8] sm:$0xff]   ;;  %v2578_v6 = vld [vmem:[#allocation7] sm:$0xff]   ;;  %vm249_vm2 = vcmask 261120   ;;  %s2787_s12 = smov [#allocation13]  }
  0x50   :  { %2195 = vmatprep.subr.mxu1 %v2785_v0  ;;  %2227 = vmatprep.mubr.msk.f32.mxu1 %vm2786_vm0, %v2785_v0  ;;  %v2579_v13 = vld [vmem:[%s3464_s5 + $0x38] sm:$0xff]   ;;  %v2580_v15 = vld [vmem:[%s3464_s5 + $0x30] sm:$0xff]   ;;  %v2581_v16 = vld [vmem:[%s3464_s5 + $0x28] sm:$0xff]   ;;  %s1904_s13 = sshll.u32 %s2787_s12, 4  ;;  %s1905_s13 = int_to_ptr.vmem [resolvable:$true] %s1904_s13 }
  0x51   :  { %2162 = vmatpush3.bf16.msra.mxu0 %v183_v3  ;;  %v2582_v17 = vld [vmem:[%s3464_s5 + $0x20] sm:$0xff]   ;;  %v2583_v18 = vld [vmem:[%s3464_s5 + $0x18] sm:$0xff]   ;;  %v2584_v19 = vld [vmem:[%s3464_s5 + $0x10] sm:$0xff]   ;;  %p2750_p3 = scmp.lt.s32.totalorder %s1905_s13, %s1905_s13 }
  0x52   :  { %2167 = vmatprep.subr.bf16.mxu0 %v2785_v0  ;;  %v2585_v20 = vld [vmem:[%s3464_s5 + $0x8] sm:$0xff]   ;;  %v2586_v21 = vld [vmem:[%s3464_s5] sm:$0xff]   ;;  %v2962_v22 = vld [vmem:[%s3461_s2 + $0x78] sm:$0xff] }
  0x53   :  { %v2967_v23 = vld [vmem:[%s3461_s2 + $0x70] sm:$0xff]  ;;  %2196 = vmatpush3.msra.mxu1 %v2962_v22  ;;  %v2974_v24 = vld [vmem:[%s3461_s2 + $0x68] sm:$0xff]  ;;  %v2981_v25 = vld [vmem:[%s3461_s2 + $0x60] sm:$0xff] }
  0x54   :  { %2164 = vmatmul.mubr.msk.bf16.vlgmr.msra.gmra.mxu0 %vm189_vm1, %v2915_v4  ;;  %2197 = vmatprep.subr.mxu1 %v2785_v0  ;;  %v2988_v26 = vld [vmem:[%s3461_s2 + $0x58] sm:$0xff]  ;;  %v2995_v27 = vld [vmem:[%s3461_s2 + $0x50] sm:$0xff]  ;;  %v3006_v35 = vld [vmem:[%s3461_s2 + $0x48] sm:$0xff] }
  0x55   :  { %2171 = vmatprep.mubr.msk.bf16.mxu0 %vm2786_vm0, %v2785_v0  ;;  %2168 = vmatpush3.bf16.msra.mxu0 %v2577_v5  ;;  %v3013_v36 = vld [vmem:[%s3461_s2 + $0x40] sm:$0xff]  ;;  %v3020_v37 = vld [vmem:[%s3461_s2 + $0x38] sm:$0xff]  ;;  %v3027_v38 = vld [vmem:[%s3461_s2 + $0x30] sm:$0xff] }
  0x56   :  { %2169 = vmatprep.subr.bf16.mxu0 %v2785_v0  ;;  %2198 = vmatpush3.msra.mxu1 %v2967_v23  ;;  %v3034_v39 = vld [vmem:[%s3461_s2 + $0x28] sm:$0xff]  ;;  %v3041_v40 = vld [vmem:[%s3461_s2 + $0x20] sm:$0xff]  ;;  %v3048_v41 = vld [vmem:[%s3461_s2 + $0x18] sm:$0xff] }
  0x57   :  { %2199 = vmatprep.subr.mxu1 %v2785_v0  ;;  %v3055_v42 = vld [vmem:[%s3461_s2 + $0x10] sm:$0xff]  ;;  %v3060_v43 = vld [vmem:[%s3461_s2 + $0x8] sm:$0xff]  ;;  %v3067_v44 = vld [vmem:[%s3461_s2] sm:$0xff] }
  0x58   :  { %2200 = vmatpush3.msra.mxu1 %v2974_v24  ;;  %v3075_v45 = vld [vmem:[%s3462_s3 + $0x18] sm:$0xff]  ;;  %v3080_v46 = vld [vmem:[%s3462_s3 + $0x10] sm:$0xff]  ;;  %v3130_v58 = vld [vmem:[%s3462_s3 + $0x8] sm:$0xff] }
  0x59   :  { %2170 = vmatpush3.bf16.msra.mxu0 %v2578_v6  ;;  %2201 = vmatprep.subr.mxu1 %v2785_v0  ;;  %v3137_v59 = vld [vmem:[%s3462_s3] sm:$0xff] }
  0x5a   :  { %2175 = vmatprep.subr.bf16.mxu0 %v2785_v0  ;;  %2202 = vmatpush3.msra.mxu1 %v2981_v25 }
  0x5b   :  { %2203 = vmatprep.subr.mxu1 %v2785_v0 }
  0x5c   :  { %2204 = vmatpush3.msra.mxu1 %v2988_v26 }
  0x5d   :  { %2205 = vmatprep.subr.mxu1 %v2785_v0 }
  0x5e   :  { %2206 = vmatpush3.msra.mxu1 %v2995_v27 }
  0x5f   :  { %2207 = vmatprep.subr.mxu1 %v2785_v0 }
  0x60   :  { %2208 = vmatpush3.msra.mxu1 %v3006_v35 }
  0x61   :  { %2209 = vmatprep.subr.mxu1 %v2785_v0 }
  0x62   :  { %2210 = vmatpush3.msra.mxu1 %v3013_v36 }
  0x63   :  { %2211 = vmatprep.subr.mxu1 %v2785_v0 }
  0x64   :  { %2212 = vmatpush3.msra.mxu1 %v3020_v37 }
  0x65   :  { %2213 = vmatprep.subr.mxu1 %v2785_v0 }
  0x66   :  { %2214 = vmatpush3.msra.mxu1 %v3027_v38 }
  0x67   :  { %2215 = vmatprep.subr.mxu1 %v2785_v0 }
  0x68   :  { %2216 = vmatpush3.msra.mxu1 %v3034_v39 }
  0x69   :  { %2217 = vmatprep.subr.mxu1 %v2785_v0 }
  0x6a   :  { %2218 = vmatpush3.msra.mxu1 %v3041_v40 }
  0x6b   :  { %2219 = vmatprep.subr.mxu1 %v2785_v0 }
  0x6c   :  { %2220 = vmatpush3.msra.mxu1 %v3048_v41 }
  0x6d   :  { %2221 = vmatprep.subr.mxu1 %v2785_v0 }
  0x6e   :  { %2222 = vmatpush3.msra.mxu1 %v3055_v42 }
  0x6f   :  { %2223 = vmatprep.subr.mxu1 %v2785_v0 }
  0x70   :  { %2224 = vmatpush3.msra.mxu1 %v3060_v43 }
  0x71   :  { %2225 = vmatprep.subr.mxu1 %v2785_v0 }
  0x72   :  { %2226 = vmatpush3.msra.mxu1 %v3067_v44 }
  0x73   :  { %2241 = vmatprep.subr.mxu1 %v2785_v0 }
 0x114   :  { %v227_v7 = vpop.f32.mrf.mxu0 }
 0x115   :  { %v234_v10 = vadd.f32 %v227_v7, %v159_v1  ;;  %v538_v1 = vshrl.u32 %v537_v63, 7  ;;  %v2594_v63 = vld [vmem:[%s3467_s8] sm:$0xff]  }
 0x116   :  { %v2165_v8 = vpop.f32.mrf.mxu0 }
 0x118   :  { %v230_v9 = vpop.f32.mrf.mxu0 }
 0x119   :  { %v235_v11 = vadd.f32 %v230_v9, %v160_v2  ;;  %v3152_v2 = vsub.s32 0, %v538_v1  ;;  %v2595_v1 = vld [vmem:[#allocation8 + $0x38] sm:$0xff]  }
 0x11a   :  { %v2166_v12 = vpop.f32.mrf.mxu0 }
 0x11b   :  { %v236_v14 = vpack.c.bf16 %v235_v11, %v234_v10 }
 0x11d   :  { %2172 = vmatmul.mubr.msk.bf16.vlgmr.msra.gmra.mxu0 %vm249_vm2, %v236_v14 }
 0x11e   :  { %2176 = vmatpush3.bf16.msra.mxu0 %v2579_v13  ;;  %2191 = vmatprep.mubr.msk.bf16.mxu0 %vm2786_vm0, %v2785_v0 }
 0x11f   :  { %2177 = vmatprep.subr.bf16.mxu0 %v2785_v0 }
 0x122   :  { %2178 = vmatpush3.bf16.msra.mxu0 %v2580_v15 }
 0x123   :  { %2179 = vmatprep.subr.bf16.mxu0 %v2785_v0 }
 0x126   :  { %2180 = vmatpush3.bf16.msra.mxu0 %v2581_v16 }
 0x127   :  { %2181 = vmatprep.subr.bf16.mxu0 %v2785_v0 }
 0x12a   :  { %2182 = vmatpush3.bf16.msra.mxu0 %v2582_v17 }
 0x12b   :  { %2183 = vmatprep.subr.bf16.mxu0 %v2785_v0 }
 0x12e   :  { %2184 = vmatpush3.bf16.msra.mxu0 %v2583_v18 }
 0x12f   :  { %2185 = vmatprep.subr.bf16.mxu0 %v2785_v0 }
 0x132   :  { %2186 = vmatpush3.bf16.msra.mxu0 %v2584_v19 }
 0x133   :  { %2187 = vmatprep.subr.bf16.mxu0 %v2785_v0 }
 0x136   :  { %2188 = vmatpush3.bf16.msra.mxu0 %v2585_v20 }
 0x137   :  { %2189 = vmatprep.subr.bf16.mxu0 %v2785_v0 }
 0x13a   :  { %2190 = vmatpush3.bf16.msra.mxu0 %v2586_v21 }
 0x13b   :  { %2230 = vmatprep.subr.mxu0 %v2785_v0 }
 0x1dd   :  { %v287_v28 = vpop.f32.mrf.mxu0 }
 0x1de   :  { %v294_v31 = vmax.f32 %v287_v28, 0.0  ;;  %v181_v28 = vld [vmem:[%s3465_s6] sm:$0x1] }
 0x1df   :  { %v2173_v29 = vpop.f32.mrf.mxu0 }
 0x1e1   :  { %v290_v30 = vpop.f32.mrf.mxu0 }
 0x1e2   :  { %v295_v32 = vmax.f32 %v290_v30, 0.0 }
 0x1e3   :  { %v2174_v33 = vpop.f32.mrf.mxu0 }
 0x1e4   :  { %v296_v34 = vpack.c.bf16 %v295_v32, %v294_v31  ;;  %v1934_v33 = vld [vmem:[%s3466_s7] ss:$0 sm:$0xff] }
 0x1e6   :  { %2192 = vmatmul.mubr.bf16.vlgmr.msra.gmra.mxu0 %v296_v34 }
 0x1e7   :  { %2238 = vmatprep.mubr.msk.f32.mxu0 %vm2786_vm0, %v2785_v0  ;;  %2231 = vmatpush3.msra.mxu0 %v3075_v45 }
 0x1e8   :  { %2232 = vmatprep.subr.mxu0 %v2785_v0 }
 0x1e9   :  { %2233 = vmatpush3.msra.mxu0 %v3080_v46 }
 0x1ea   :  { %2234 = vmatprep.subr.mxu0 %v2785_v0 }
 0x1eb   :  { %2235 = vmatpush3.msra.mxu0 %v3130_v58 }
 0x1ec   :  { %2236 = vmatprep.subr.mxu0 %v2785_v0 }
 0x1ed   :  { %2237 = vmatpush3.msra.mxu0 %v3137_v59 }
 0x1ee   :  { %2276 = vmatprep.subr.mxu0 %v2785_v0 }
 0x2a6   :  { %v3087_v47 = vpop.f32.mrf.mxu0 }
 0x2a8   :  { %v2193_v48 = vpop.f32.mrf.mxu0 }
 0x2aa   :  { %v3089_v49 = vpop.f32.mrf.mxu0 }
 0x2ab   :  { %v386_v50 = vadd.f32 %v3089_v49, %v3087_v47 }
 0x2ac   :  { %v2194_v51 = vpop.f32.mrf.mxu0 }
 0x2ad   :  { %v387_v52 = vrot.slane %v386_v50, 4 }
 0x2af   :  { %v388_v53 = vadd.f32 %v387_v52, %v386_v50 }
 0x2b1   :  { %v389_v54 = vrot.slane %v388_v53, 2 }
 0x2b3   :  { %v390_v55 = vadd.f32 %v389_v54, %v388_v53  ;;  %v2587_v54 = vld [vmem:[%s3467_s8 + $0x38] sm:$0xff]  }
 0x2b5   :  { %v391_v56 = vrot.slane %v390_v55, 1 }
 0x2b7   :  { %v392_v57 = vadd.f32 %v391_v56, %v390_v55  ;;  %v2588_v55 = vld [vmem:[%s3467_s8 + $0x30] sm:$0xff]   ;;  %v2589_v56 = vld [vmem:[%s3467_s8 + $0x28] sm:$0xff]  }
 0x2b9   :  { %2228 = vmatmul.mubr.f32.vlgmr.msra.gmra.mxu1 %v392_v57  ;;  %v2590_v57 = vld [vmem:[%s3467_s8 + $0x20] sm:$0xff]  }
 0x2ba   :  { %2242 = vmatpush3.msra.mxu1 %v2962_v22  ;;  %2273 = vmatprep.mubr.msk.f32.mxu1 %vm2786_vm0, %v2785_v0 }
 0x2bb   :  { %2243 = vmatprep.subr.mxu1 %v2785_v0 }
 0x2bc   :  { %2244 = vmatpush3.msra.mxu1 %v2967_v23 }
 0x2bd   :  { %2245 = vmatprep.subr.mxu1 %v2785_v0 }
 0x2be   :  { %2246 = vmatpush3.msra.mxu1 %v2974_v24 }
 0x2bf   :  { %2247 = vmatprep.subr.mxu1 %v2785_v0 }
 0x2c0   :  { %2248 = vmatpush3.msra.mxu1 %v2981_v25 }
 0x2c1   :  { %2249 = vmatprep.subr.mxu1 %v2785_v0 }
 0x2c2   :  { %2250 = vmatpush3.msra.mxu1 %v2988_v26 }
 0x2c3   :  { %2251 = vmatprep.subr.mxu1 %v2785_v0 }
 0x2c4   :  { %2252 = vmatpush3.msra.mxu1 %v2995_v27 }
 0x2c5   :  { %2253 = vmatprep.subr.mxu1 %v2785_v0 }
 0x2c6   :  { %2254 = vmatpush3.msra.mxu1 %v3006_v35 }
 0x2c7   :  { %2255 = vmatprep.subr.mxu1 %v2785_v0 }
 0x2c8   :  { %2256 = vmatpush3.msra.mxu1 %v3013_v36 }
 0x2c9   :  { %2257 = vmatprep.subr.mxu1 %v2785_v0 }
 0x2ca   :  { %2258 = vmatpush3.msra.mxu1 %v3020_v37 }
 0x2cb   :  { %2259 = vmatprep.subr.mxu1 %v2785_v0 }
 0x2cc   :  { %2260 = vmatpush3.msra.mxu1 %v3027_v38 }
 0x2cd   :  { %2261 = vmatprep.subr.mxu1 %v2785_v0 }
 0x2ce   :  { %2262 = vmatpush3.msra.mxu1 %v3034_v39 }
 0x2cf   :  { %2263 = vmatprep.subr.mxu1 %v2785_v0 }
 0x2d0   :  { %2264 = vmatpush3.msra.mxu1 %v3041_v40 }
 0x2d1   :  { %2265 = vmatprep.subr.mxu1 %v2785_v0 }
 0x2d2   :  { %2266 = vmatpush3.msra.mxu1 %v3048_v41 }
 0x2d3   :  { %2267 = vmatprep.subr.mxu1 %v2785_v0 }
 0x2d4   :  { %2268 = vmatpush3.msra.mxu1 %v3055_v42 }
 0x2d5   :  { %2269 = vmatprep.subr.mxu1 %v2785_v0 }
 0x2d6   :  { %2270 = vmatpush3.msra.mxu1 %v3060_v43 }
 0x2d7   :  { %2271 = vmatprep.subr.mxu1 %v2785_v0 }
 0x2d8   :  { %2272 = vmatpush3.msra.mxu1 %v3067_v44 }
 0x2d9   :  { %2313 = vmatprep.subr.bf16.mxu1 %v2785_v0 }
 0x379   :  { %v459_v60 = vpop.f32.mrf.mxu1 }
 0x37a   :  { %v463_v61 = vmul.f32 0.015625, %v459_v60  ;;  %v2591_v60 = vld [vmem:[%s3467_s8 + $0x18] sm:$0xff]  }
 0x37b   :  { %v2229_v62 = vpop.f32.mrf.mxu1 }
 0x37c   :  { %2239 = vmatmul.mubr.msk.f32.vlgmr.msra.gmra.mxu0 %vm249_vm2, %v463_v61  ;;  %v2592_v61 = vld [vmem:[%s3467_s8 + $0x10] sm:$0xff]   ;;  %v2593_v62 = vld [vmem:[%s3467_s8 + $0x8] sm:$0xff]  }
 0x37d   :  { %2277 = vmatpush3.msra.mxu0 %v3075_v45  ;;  %2284 = vmatprep.mubr.msk.f32.mxu0 %vm2786_vm0, %v2785_v0 }
 0x37e   :  { %2278 = vmatprep.subr.mxu0 %v2785_v0 }
 0x37f   :  { %2279 = vmatpush3.msra.mxu0 %v3080_v46 }
 0x380   :  { %2280 = vmatprep.subr.mxu0 %v2785_v0 }
 0x381   :  { %2281 = vmatpush3.msra.mxu0 %v3130_v58 }
 0x382   :  { %2282 = vmatprep.subr.mxu0 %v2785_v0 }
 0x383   :  { %2283 = vmatpush3.msra.mxu0 %v3137_v59 }
 0x384   :  { %2287 = vmatprep.subr.bf16.mxu0 %v2785_v0 }
 0x43c   :  { %v533_v3 = vpop.f32.mrf.mxu0 }
 0x43d   :  { %v540_v5 = vrot.slane %v533_v3, %v3152_v2  ;;  %v2596_v3 = vld [vmem:[#allocation8 + $0x30] sm:$0xff]  }
 0x43e   :  { %v2240_v6 = vpop.f32.mrf.mxu0 }
 0x43f   :  { %v541_v7 = vsub.f32 %v3087_v47, %v540_v5  ;;  %v542_v8 = vsub.f32 %v3089_v49, %v540_v5  ;;  %v2597_v5 = vld [vmem:[#allocation8 + $0x28] sm:$0xff]   ;;  %v2598_v6 = vld [vmem:[#allocation8 + $0x20] sm:$0xff]  }
 0x441   :  { %v543_v9 = vmul.f32 %v541_v7, %v541_v7  ;;  %v544_v10 = vmul.f32 %v542_v8, %v542_v8 }
 0x443   :  { %v545_v11 = vadd.f32 %v544_v10, %v543_v9 }
 0x445   :  { %v546_v12 = vrot.slane %v545_v11, 4 }
 0x447   :  { %v547_v13 = vadd.f32 %v546_v12, %v545_v11 }
 0x449   :  { %v548_v14 = vrot.slane %v547_v13, 2 }
 0x44b   :  { %v549_v15 = vadd.f32 %v548_v14, %v547_v13 }
 0x44d   :  { %v550_v16 = vrot.slane %v549_v15, 1 }
 0x44f   :  { %v551_v17 = vadd.f32 %v550_v16, %v549_v15  ;;  %v2601_v16 = vld [vmem:[#allocation8 + $0x8] sm:$0xff]  }
 0x451   :  { %2274 = vmatmul.mubr.f32.vlgmr.msra.gmra.mxu1 %v551_v17  ;;  %v2602_v17 = vld [vmem:[#allocation8] sm:$0xff]  }
 0x452   :  { %2329 = vmatprep.mubr.msk.bf16.mxu1 %vm2786_vm0, %v2785_v0  ;;  %2314 = vmatpush3.bf16.msra.mxu1 %v2595_v1 }
 0x453   :  { %2315 = vmatprep.subr.bf16.mxu1 %v2785_v0 }
 0x456   :  { %2316 = vmatpush3.bf16.msra.mxu1 %v2596_v3 }
 0x457   :  { %2317 = vmatprep.subr.bf16.mxu1 %v2785_v0 }
 0x45a   :  { %2318 = vmatpush3.bf16.msra.mxu1 %v2597_v5 }
 0x45b   :  { %2319 = vmatprep.subr.bf16.mxu1 %v2785_v0 }
 0x45e   :  { %2320 = vmatpush3.bf16.msra.mxu1 %v2598_v6 }
 0x45f   :  { %2321 = vmatprep.subr.bf16.mxu1 %v2785_v0 }
 0x511   :  { %v618_v18 = vpop.f32.mrf.mxu1 }
 0x512   :  { %v622_v19 = vmul.f32 0.015625, %v618_v18 }
 0x513   :  { %v2275_v20 = vpop.f32.mrf.mxu1 }
 0x514   :  { %v623_v21 = vadd.f32 1e-05, %v622_v19 }
 0x516   :  { %2619 = vrsqrt.f32 %v623_v21 }
 0x523   :  { %v2620_v29 = vpop.eup %2619 }
 0x524   :  { %v625_v30 = vmul.f32 %v2620_v29, %v181_v28 }
 0x526   :  { %2285 = vmatmul.mubr.msk.f32.vlgmr.msra.gmra.mxu0 %vm249_vm2, %v625_v30 }
 0x527   :  { %2289 = vmatprep.mubr.msk.bf16.mxu0 %vm2786_vm0, %v2785_v0 }
 0x5e6   :  { %v695_v31 = vpop.f32.mrf.mxu0 }
 0x5e7   :  { %v702_v32 = vrot.slane %v695_v31, %v3152_v2 }
 0x5e8   :  { %v2286_v34 = vpop.f32.mrf.mxu0 }
 0x5e9   :  { %v703_v47 = vmul.f32 %v702_v32, %v541_v7  ;;  %v704_v48 = vmul.f32 %v702_v32, %v542_v8  ;;  %v2599_v7 = vld [vmem:[#allocation8 + $0x18] sm:$0xff]   ;;  %v2600_v8 = vld [vmem:[#allocation8 + $0x10] sm:$0xff]  }
 0x5ea   :  { %2322 = vmatpush3.bf16.msra.mxu1 %v2599_v7 }
 0x5eb   :  { %v711_v49 = vadd.f32 %v1934_v33, %v703_v47  ;;  %v712_v50 = vadd.f32 %v1934_v33, %v704_v48  ;;  %2323 = vmatprep.subr.bf16.mxu1 %v2785_v0 }
 0x5ed   :  { %v3169_v51 = vmax.f32 %v711_v49, 0.0  ;;  %v3171_v52 = vmax.f32 %v712_v50, 0.0 }
 0x5ee   :  { %2324 = vmatpush3.bf16.msra.mxu1 %v2600_v8 }
 0x5ef   :  { %v749_v53 = vpack.c.bf16 %v3171_v52, %v3169_v51  ;;  %2325 = vmatprep.subr.bf16.mxu1 %v2785_v0 }
 0x5f1   :  { %2288 = vmatpush3.bf16.msra.mxu0 %v749_v53 }
 0x5f2   :  { %2293 = vmatprep.subr.bf16.mxu0 %v2785_v0  ;;  %2326 = vmatpush3.bf16.msra.mxu1 %v2601_v16 }
 0x5f3   :  { %2327 = vmatprep.subr.bf16.mxu1 %v2785_v0 }
 0x5f4   :  { %2290 = vmatmul.mubr.msk.bf16.vlgmr.msra.gmra.mxu0 %vm189_vm1, %v2915_v4 }
 0x5f5   :  { %2294 = vmatpush3.bf16.msra.mxu0 %v2587_v54  ;;  %2309 = vmatprep.mubr.msk.bf16.mxu0 %vm2786_vm0, %v2785_v0 }
 0x5f6   :  { %2295 = vmatprep.subr.bf16.mxu0 %v2785_v0  ;;  %2328 = vmatpush3.bf16.msra.mxu1 %v2602_v17 }
 0x5f7   :  { %2368 = vmatprep.subr.mxu1 %v2785_v0 }
 0x5f9   :  { %2296 = vmatpush3.bf16.msra.mxu0 %v2588_v55 }
 0x5fa   :  { %2297 = vmatprep.subr.bf16.mxu0 %v2785_v0 }
 0x5fd   :  { %2298 = vmatpush3.bf16.msra.mxu0 %v2589_v56 }
 0x5fe   :  { %2299 = vmatprep.subr.bf16.mxu0 %v2785_v0 }
 0x601   :  { %2300 = vmatpush3.bf16.msra.mxu0 %v2590_v57 }
 0x602   :  { %2301 = vmatprep.subr.bf16.mxu0 %v2785_v0 }
 0x605   :  { %2302 = vmatpush3.bf16.msra.mxu0 %v2591_v60 }
 0x606   :  { %2303 = vmatprep.subr.bf16.mxu0 %v2785_v0 }
 0x609   :  { %2304 = vmatpush3.bf16.msra.mxu0 %v2592_v61 }
 0x60a   :  { %2305 = vmatprep.subr.bf16.mxu0 %v2785_v0 }
 0x60d   :  { %2306 = vmatpush3.bf16.msra.mxu0 %v2593_v62 }
 0x60e   :  { %2307 = vmatprep.subr.bf16.mxu0 %v2785_v0 }
 0x611   :  { %2308 = vmatpush3.bf16.msra.mxu0 %v2594_v63 }
 0x612   :  { %2333 = vmatprep.subr.mxu0 %v2785_v0 }
 0x6b4   :  { %v784_v9 = vpop.f32.mrf.mxu0 }
 0x6b5   :  { %v791_v12 = vadd.f32 %v784_v9, %v3169_v51 }
 0x6b6   :  { %v2291_v10 = vpop.f32.mrf.mxu0 }
 0x6b8   :  { %v787_v11 = vpop.f32.mrf.mxu0 }
 0x6b9   :  { %v792_v13 = vadd.f32 %v787_v11, %v3171_v52 }
 0x6ba   :  { %v2292_v14 = vpop.f32.mrf.mxu0 }
 0x6bb   :  { %v793_v15 = vpack.c.bf16 %v792_v13, %v791_v12 }
 0x6bd   :  { %2310 = vmatmul.mubr.bf16.vlgmr.msra.gmra.mxu0 %v793_v15 }
 0x6be   :  { %2334 = vmatpush3.msra.mxu0 %v2962_v22  ;;  %2365 = vmatprep.mubr.msk.f32.mxu0 %vm2786_vm0, %v2785_v0 }
 0x6bf   :  { %2335 = vmatprep.subr.mxu0 %v2785_v0 }
 0x6c0   :  { %2336 = vmatpush3.msra.mxu0 %v2967_v23 }
 0x6c1   :  { %2337 = vmatprep.subr.mxu0 %v2785_v0 }
 0x6c2   :  { %2338 = vmatpush3.msra.mxu0 %v2974_v24 }
 0x6c3   :  { %2339 = vmatprep.subr.mxu0 %v2785_v0 }
 0x6c4   :  { %2340 = vmatpush3.msra.mxu0 %v2981_v25 }
 0x6c5   :  { %2341 = vmatprep.subr.mxu0 %v2785_v0 }
 0x6c6   :  { %2342 = vmatpush3.msra.mxu0 %v2988_v26 }
 0x6c7   :  { %2343 = vmatprep.subr.mxu0 %v2785_v0 }
 0x6c8   :  { %2344 = vmatpush3.msra.mxu0 %v2995_v27 }
 0x6c9   :  { %2345 = vmatprep.subr.mxu0 %v2785_v0 }
 0x6ca   :  { %2346 = vmatpush3.msra.mxu0 %v3006_v35 }
 0x6cb   :  { %2347 = vmatprep.subr.mxu0 %v2785_v0 }
 0x6cc   :  { %2348 = vmatpush3.msra.mxu0 %v3013_v36 }
 0x6cd   :  { %2349 = vmatprep.subr.mxu0 %v2785_v0 }
 0x6ce   :  { %2350 = vmatpush3.msra.mxu0 %v3020_v37 }
 0x6cf   :  { %2351 = vmatprep.subr.mxu0 %v2785_v0 }
 0x6d0   :  { %2352 = vmatpush3.msra.mxu0 %v3027_v38 }
 0x6d1   :  { %2353 = vmatprep.subr.mxu0 %v2785_v0 }
 0x6d2   :  { %2354 = vmatpush3.msra.mxu0 %v3034_v39 }
 0x6d3   :  { %2355 = vmatprep.subr.mxu0 %v2785_v0 }
 0x6d4   :  { %2356 = vmatpush3.msra.mxu0 %v3041_v40 }
 0x6d5   :  { %2357 = vmatprep.subr.mxu0 %v2785_v0 }
 0x6d6   :  { %2358 = vmatpush3.msra.mxu0 %v3048_v41 }
 0x6d7   :  { %2359 = vmatprep.subr.mxu0 %v2785_v0 }
 0x6d8   :  { %2360 = vmatpush3.msra.mxu0 %v3055_v42 }
 0x6d9   :  { %2361 = vmatprep.subr.mxu0 %v2785_v0 }
 0x6da   :  { %2362 = vmatpush3.msra.mxu0 %v3060_v43 }
 0x6db   :  { %2363 = vmatprep.subr.mxu0 %v2785_v0 }
 0x6dc   :  { %2364 = vmatpush3.msra.mxu0 %v3067_v44 }
 0x6dd   :  { %2414 = vmatprep.subr.mxu0 %v2785_v0 }
 0x77d   :  { %v876_v18 = vpop.f32.mrf.mxu0 }
 0x77e   :  { %v883_v21 = vmax.f32 %v876_v18, 0.0  ;;  %v747_v18 = vld [vmem:[%s3469_s10] sm:$0x1] }
 0x77f   :  { %v2311_v19 = vpop.f32.mrf.mxu0 }
 0x781   :  { %v879_v20 = vpop.f32.mrf.mxu0 }
 0x782   :  { %v884_v28 = vmax.f32 %v879_v20, 0.0 }
 0x783   :  { %v2312_v29 = vpop.f32.mrf.mxu0 }
 0x784   :  { %v885_v30 = vpack.c.bf16 %v884_v28, %v883_v21  ;;  %v1954_v29 = vld [vmem:[%s3470_s11] ss:$0 sm:$0xff] }
 0x786   :  { %2330 = vmatmul.mubr.bf16.vlgmr.msra.gmra.mxu1 %v885_v30 }
 0x787   :  { %2369 = vmatpush3.msra.mxu1 %v3075_v45  ;;  %2376 = vmatprep.mubr.msk.f32.mxu1 %vm2786_vm0, %v2785_v0 }
 0x788   :  { %2370 = vmatprep.subr.mxu1 %v2785_v0 }
 0x789   :  { %2371 = vmatpush3.msra.mxu1 %v3080_v46 }
 0x78a   :  { %2372 = vmatprep.subr.mxu1 %v2785_v0 }
 0x78b   :  { %2373 = vmatpush3.msra.mxu1 %v3130_v58 }
 0x78c   :  { %2374 = vmatprep.subr.mxu1 %v2785_v0 }
 0x78d   :  { %2375 = vmatpush3.msra.mxu1 %v3137_v59 }
 0x78e   :  { %2379 = vmatprep.subr.mxu1 %v2785_v0 }
 0x846   :  { %v968_v31 = vpop.f32.mrf.mxu1 }
 0x848   :  { %v2331_v32 = vpop.f32.mrf.mxu1 }
 0x84a   :  { %v971_v33 = vpop.f32.mrf.mxu1 }
 0x84b   :  { %v975_v34 = vadd.f32 %v971_v33, %v968_v31 }
 0x84c   :  { %v2332_v47 = vpop.f32.mrf.mxu1 }
 0x84d   :  { %v976_v48 = vrot.slane %v975_v34, 4 }
 0x84f   :  { %v977_v49 = vadd.f32 %v976_v48, %v975_v34 }
 0x851   :  { %v978_v50 = vrot.slane %v977_v49, 2 }
 0x853   :  { %v979_v53 = vadd.f32 %v978_v50, %v977_v49 }
 0x855   :  { %v980_v54 = vrot.slane %v979_v53, 1 }
 0x857   :  { %v981_v55 = vadd.f32 %v980_v54, %v979_v53  ;;  %v2603_v54 = vld [vmem:[#allocation10 + $0x38] sm:$0xff]  }
 0x859   :  { %2366 = vmatmul.mubr.f32.vlgmr.msra.gmra.mxu0 %v981_v55  ;;  %v2604_v55 = vld [vmem:[#allocation10 + $0x30] sm:$0xff]  }
 0x85a   :  { %2415 = vmatpush3.msra.mxu0 %v3075_v45  ;;  %2422 = vmatprep.mubr.msk.f32.mxu0 %vm2786_vm0, %v2785_v0 }
 0x85b   :  { %2416 = vmatprep.subr.mxu0 %v2785_v0 }
 0x85c   :  { %2417 = vmatpush3.msra.mxu0 %v3080_v46 }
 0x85d   :  { %2418 = vmatprep.subr.mxu0 %v2785_v0 }
 0x85e   :  { %2419 = vmatpush3.msra.mxu0 %v3130_v58 }
 0x85f   :  { %2420 = vmatprep.subr.mxu0 %v2785_v0 }
 0x860   :  { %2421 = vmatpush3.msra.mxu0 %v3137_v59 }
 0x861   :  { %2425 = vmatprep.subr.bf16.mxu0 %v2785_v0 }
 0x919   :  { %v1048_v56 = vpop.f32.mrf.mxu0 }
 0x91a   :  { %v1052_v57 = vmul.f32 0.015625, %v1048_v56  ;;  %v2607_v56 = vld [vmem:[#allocation10 + $0x18] sm:$0xff]  }
 0x91b   :  { %v2367_v60 = vpop.f32.mrf.mxu0 }
 0x91c   :  { %2377 = vmatmul.mubr.msk.f32.vlgmr.msra.gmra.mxu1 %vm249_vm2, %v1052_v57  ;;  %v2609_v57 = vld [vmem:[#allocation10 + $0x8] sm:$0xff]   ;;  %v2610_v60 = vld [vmem:[#allocation10] sm:$0xff]  }
 0x91d   :  { %2380 = vmatpush3.msra.mxu1 %v2962_v22  ;;  %2411 = vmatprep.mubr.msk.f32.mxu1 %vm2786_vm0, %v2785_v0 }
 0x91e   :  { %2381 = vmatprep.subr.mxu1 %v2785_v0 }
 0x91f   :  { %2382 = vmatpush3.msra.mxu1 %v2967_v23 }
 0x920   :  { %2383 = vmatprep.subr.mxu1 %v2785_v0 }
 0x921   :  { %2384 = vmatpush3.msra.mxu1 %v2974_v24 }
 0x922   :  { %2385 = vmatprep.subr.mxu1 %v2785_v0 }
 0x923   :  { %2386 = vmatpush3.msra.mxu1 %v2981_v25 }
 0x924   :  { %2387 = vmatprep.subr.mxu1 %v2785_v0 }
 0x925   :  { %2388 = vmatpush3.msra.mxu1 %v2988_v26 }
 0x926   :  { %2389 = vmatprep.subr.mxu1 %v2785_v0 }
 0x927   :  { %2390 = vmatpush3.msra.mxu1 %v2995_v27 }
 0x928   :  { %2391 = vmatprep.subr.mxu1 %v2785_v0 }
 0x929   :  { %2392 = vmatpush3.msra.mxu1 %v3006_v35 }
 0x92a   :  { %2393 = vmatprep.subr.mxu1 %v2785_v0 }
 0x92b   :  { %2394 = vmatpush3.msra.mxu1 %v3013_v36 }
 0x92c   :  { %2395 = vmatprep.subr.mxu1 %v2785_v0 }
 0x92d   :  { %2396 = vmatpush3.msra.mxu1 %v3020_v37 }
 0x92e   :  { %2397 = vmatprep.subr.mxu1 %v2785_v0 }
 0x92f   :  { %2398 = vmatpush3.msra.mxu1 %v3027_v38 }
 0x930   :  { %2399 = vmatprep.subr.mxu1 %v2785_v0 }
 0x931   :  { %2400 = vmatpush3.msra.mxu1 %v3034_v39 }
 0x932   :  { %2401 = vmatprep.subr.mxu1 %v2785_v0 }
 0x933   :  { %2402 = vmatpush3.msra.mxu1 %v3041_v40 }
 0x934   :  { %2403 = vmatprep.subr.mxu1 %v2785_v0 }
 0x935   :  { %2404 = vmatpush3.msra.mxu1 %v3048_v41 }
 0x936   :  { %2405 = vmatprep.subr.mxu1 %v2785_v0 }
 0x937   :  { %2406 = vmatpush3.msra.mxu1 %v3055_v42 }
 0x938   :  { %2407 = vmatprep.subr.mxu1 %v2785_v0 }
 0x939   :  { %2408 = vmatpush3.msra.mxu1 %v3060_v43 }
 0x93a   :  { %2409 = vmatprep.subr.mxu1 %v2785_v0 }
 0x93b   :  { %2410 = vmatpush3.msra.mxu1 %v3067_v44 }
 0x93c   :  { %2451 = vmatprep.subr.bf16.mxu1 %v2785_v0 }
 0x9dc   :  { %v1122_v61 = vpop.f32.mrf.mxu1 }
 0x9dd   :  { %v1129_v62 = vrot.slane %v1122_v61, %v3152_v2  ;;  %v2611_v61 = vld [vmem:[#allocation11 + $0x38] sm:$0xff]  }
 0x9de   :  { %v2378_v63 = vpop.f32.mrf.mxu1 }
 0x9df   :  { %v1130_v1 = vsub.f32 %v968_v31, %v1129_v62  ;;  %v1131_v3 = vsub.f32 %v971_v33, %v1129_v62  ;;  %v2612_v62 = vld [vmem:[#allocation11 + $0x30] sm:$0xff]   ;;  %v2613_v63 = vld [vmem:[#allocation11 + $0x28] sm:$0xff]  }
 0x9e1   :  { %v1132_v5 = vmul.f32 %v1130_v1, %v1130_v1  ;;  %v1133_v6 = vmul.f32 %v1131_v3, %v1131_v3 }
 0x9e3   :  { %v1134_v7 = vadd.f32 %v1133_v6, %v1132_v5  ;;  %v2616_v5 = vld [vmem:[#allocation11 + $0x10] sm:$0xff]  }
 0x9e5   :  { %v1135_v8 = vrot.slane %v1134_v7, 4 }
 0x9e7   :  { %v1136_v9 = vadd.f32 %v1135_v8, %v1134_v7 }
 0x9e9   :  { %v1137_v10 = vrot.slane %v1136_v9, 2 }
 0x9eb   :  { %v1138_v11 = vadd.f32 %v1137_v10, %v1136_v9 }
 0x9ed   :  { %v1139_v12 = vrot.slane %v1138_v11, 1 }
 0x9ef   :  { %v1140_v13 = vadd.f32 %v1139_v12, %v1138_v11 }
 0x9f1   :  { %2412 = vmatmul.mubr.f32.vlgmr.msra.gmra.mxu1 %v1140_v13  ;;  %v2617_v13 = vld [vmem:[#allocation11 + $0x8] sm:$0xff]  }
 0x9f2   :  { %2467 = vmatprep.mubr.msk.bf16.mxu1 %vm2786_vm0, %v2785_v0  ;;  %2452 = vmatpush3.bf16.msra.mxu1 %v2611_v61 }
 0x9f3   :  { %2453 = vmatprep.subr.bf16.mxu1 %v2785_v0 }
 0x9f6   :  { %2454 = vmatpush3.bf16.msra.mxu1 %v2612_v62 }
 0x9f7   :  { %2455 = vmatprep.subr.bf16.mxu1 %v2785_v0 }
 0x9fa   :  { %2456 = vmatpush3.bf16.msra.mxu1 %v2613_v63 }
 0x9fb   :  { %2457 = vmatprep.subr.bf16.mxu1 %v2785_v0 }
 0xab1   :  { %v1207_v14 = vpop.f32.mrf.mxu1 }
 0xab2   :  { %v1211_v15 = vmul.f32 0.015625, %v1207_v14  ;;  %v2618_v14 = vld [vmem:[#allocation11] sm:$0xff]  }
 0xab3   :  { %v2413_v16 = vpop.f32.mrf.mxu1 }
 0xab4   :  { %v1212_v17 = vadd.f32 1e-05, %v1211_v15 }
 0xab6   :  { %2621 = vrsqrt.f32 %v1212_v17 }
 0xac3   :  { %v2622_v19 = vpop.eup %2621 }
 0xac4   :  { %v1214_v20 = vmul.f32 %v2622_v19, %v747_v18 }
 0xac6   :  { %2423 = vmatmul.mubr.msk.f32.vlgmr.msra.gmra.mxu0 %vm249_vm2, %v1214_v20 }
 0xac7   :  { %2427 = vmatprep.mubr.msk.bf16.mxu0 %vm2786_vm0, %v2785_v0 }
 0xb86   :  { %v1284_v21 = vpop.f32.mrf.mxu0 }
 0xb87   :  { %v1291_v28 = vrot.slane %v1284_v21, %v3152_v2 }
 0xb88   :  { %v2424_v30 = vpop.f32.mrf.mxu0 }
 0xb89   :  { %v1292_v31 = vmul.f32 %v1291_v28, %v1130_v1  ;;  %v1293_v32 = vmul.f32 %v1291_v28, %v1131_v3  ;;  %v2614_v1 = vld [vmem:[#allocation11 + $0x20] sm:$0xff]   ;;  %v2615_v3 = vld [vmem:[#allocation11 + $0x18] sm:$0xff]  }
 0xb8a   :  { %2458 = vmatpush3.bf16.msra.mxu1 %v2614_v1 }
 0xb8b   :  { %v1300_v33 = vadd.f32 %v1954_v29, %v1292_v31  ;;  %v1301_v34 = vadd.f32 %v1954_v29, %v1293_v32  ;;  %2459 = vmatprep.subr.bf16.mxu1 %v2785_v0 }
 0xb8d   :  { %v1302_v47 = vmax.f32 %v1300_v33, 0.0  ;;  %v1303_v48 = vmax.f32 %v1301_v34, 0.0 }
 0xb8e   :  { %2460 = vmatpush3.bf16.msra.mxu1 %v2615_v3 }
 0xb8f   :  { %v3325_v49 = vadd.f32 %v1302_v47, %v3169_v51  ;;  %v3328_v50 = vadd.f32 %v1303_v48, %v3171_v52  ;;  %v2605_v51 = vld [vmem:[#allocation10 + $0x28] sm:$0xff]   ;;  %v2606_v52 = vld [vmem:[#allocation10 + $0x20] sm:$0xff]   ;;  %2461 = vmatprep.subr.bf16.mxu1 %v2785_v0 }
 0xb91   :  { %v1340_v53 = vpack.c.bf16 %v3328_v50, %v3325_v49 }
 0xb92   :  { %2462 = vmatpush3.bf16.msra.mxu1 %v2616_v5 }
 0xb93   :  { %2426 = vmatpush3.bf16.msra.mxu0 %v1340_v53  ;;  %2463 = vmatprep.subr.bf16.mxu1 %v2785_v0 }
 0xb94   :  { %2431 = vmatprep.subr.bf16.mxu0 %v2785_v0 }
 0xb96   :  { %2428 = vmatmul.mubr.msk.bf16.vlgmr.msra.gmra.mxu0 %vm189_vm1, %v2915_v4  ;;  %v2608_v4 = vld [vmem:[#allocation10 + $0x10] sm:$0xff]   ;;  %2464 = vmatpush3.bf16.msra.mxu1 %v2617_v13 }
 0xb97   :  { %2432 = vmatpush3.bf16.msra.mxu0 %v2603_v54  ;;  %2447 = vmatprep.mubr.msk.bf16.mxu0 %vm2786_vm0, %v2785_v0 }
 0xb98   :  { %2433 = vmatprep.subr.bf16.mxu0 %v2785_v0  ;;  %2465 = vmatprep.subr.bf16.mxu1 %v2785_v0 }
 0xb9a   :  { %2466 = vmatpush3.bf16.msra.mxu1 %v2618_v14 }
 0xb9b   :  { %2434 = vmatpush3.bf16.msra.mxu0 %v2604_v55  ;;  %2506 = vmatprep.subr.mxu1 %v2785_v0 }
 0xb9c   :  { %2435 = vmatprep.subr.bf16.mxu0 %v2785_v0 }
 0xb9f   :  { %2436 = vmatpush3.bf16.msra.mxu0 %v2605_v51 }
 0xba0   :  { %2437 = vmatprep.subr.bf16.mxu0 %v2785_v0 }
 0xba3   :  { %2438 = vmatpush3.bf16.msra.mxu0 %v2606_v52 }
 0xba4   :  { %2439 = vmatprep.subr.bf16.mxu0 %v2785_v0 }
 0xba7   :  { %2440 = vmatpush3.bf16.msra.mxu0 %v2607_v56 }
 0xba8   :  { %2441 = vmatprep.subr.bf16.mxu0 %v2785_v0 }
 0xbab   :  { %2442 = vmatpush3.bf16.msra.mxu0 %v2608_v4 }
 0xbac   :  { %2443 = vmatprep.subr.bf16.mxu0 %v2785_v0 }
 0xbaf   :  { %2444 = vmatpush3.bf16.msra.mxu0 %v2609_v57  ;;  %v1974_v57 = vld [vmem:[%s3474_s15] ss:$0 sm:$0xff] }
 0xbb0   :  { %2445 = vmatprep.subr.bf16.mxu0 %v2785_v0 }
 0xbb3   :  { %2446 = vmatpush3.bf16.msra.mxu0 %v2610_v60 }
 0xbb4   :  { %2471 = vmatprep.subr.mxu0 %v2785_v0 }
 0xc56   :  { %v1375_v6 = vpop.f32.mrf.mxu0 }
 0xc57   :  { %v1382_v9 = vadd.f32 %v1375_v6, %v3325_v49 }
 0xc58   :  { %v2429_v7 = vpop.f32.mrf.mxu0 }
 0xc5a   :  { %v1378_v8 = vpop.f32.mrf.mxu0 }
 0xc5b   :  { %v1383_v10 = vadd.f32 %v1378_v8, %v3328_v50 }
 0xc5c   :  { %v2430_v11 = vpop.f32.mrf.mxu0 }
 0xc5d   :  { %v1384_v12 = vpack.c.bf16 %v1383_v10, %v1382_v9 }
 0xc5f   :  { %2448 = vmatmul.mubr.bf16.vlgmr.msra.gmra.mxu0 %v1384_v12 }
 0xc60   :  { %2472 = vmatpush3.msra.mxu0 %v2962_v22  ;;  %2503 = vmatprep.mubr.msk.f32.mxu0 %vm2786_vm0, %v2785_v0 }
 0xc61   :  { %2473 = vmatprep.subr.mxu0 %v2785_v0 }
 0xc62   :  { %2474 = vmatpush3.msra.mxu0 %v2967_v23 }
 0xc63   :  { %2475 = vmatprep.subr.mxu0 %v2785_v0 }
 0xc64   :  { %2476 = vmatpush3.msra.mxu0 %v2974_v24 }
 0xc65   :  { %2477 = vmatprep.subr.mxu0 %v2785_v0 }
 0xc66   :  { %2478 = vmatpush3.msra.mxu0 %v2981_v25 }
 0xc67   :  { %2479 = vmatprep.subr.mxu0 %v2785_v0 }
 0xc68   :  { %2480 = vmatpush3.msra.mxu0 %v2988_v26 }
 0xc69   :  { %2481 = vmatprep.subr.mxu0 %v2785_v0 }
 0xc6a   :  { %2482 = vmatpush3.msra.mxu0 %v2995_v27 }
 0xc6b   :  { %2483 = vmatprep.subr.mxu0 %v2785_v0 }
 0xc6c   :  { %2484 = vmatpush3.msra.mxu0 %v3006_v35 }
 0xc6d   :  { %2485 = vmatprep.subr.mxu0 %v2785_v0 }
 0xc6e   :  { %2486 = vmatpush3.msra.mxu0 %v3013_v36 }
 0xc6f   :  { %2487 = vmatprep.subr.mxu0 %v2785_v0 }
 0xc70   :  { %2488 = vmatpush3.msra.mxu0 %v3020_v37 }
 0xc71   :  { %2489 = vmatprep.subr.mxu0 %v2785_v0 }
 0xc72   :  { %2490 = vmatpush3.msra.mxu0 %v3027_v38 }
 0xc73   :  { %2491 = vmatprep.subr.mxu0 %v2785_v0 }
 0xc74   :  { %2492 = vmatpush3.msra.mxu0 %v3034_v39 }
 0xc75   :  { %2493 = vmatprep.subr.mxu0 %v2785_v0 }
 0xc76   :  { %2494 = vmatpush3.msra.mxu0 %v3041_v40 }
 0xc77   :  { %2495 = vmatprep.subr.mxu0 %v2785_v0 }
 0xc78   :  { %2496 = vmatpush3.msra.mxu0 %v3048_v41 }
 0xc79   :  { %2497 = vmatprep.subr.mxu0 %v2785_v0 }
 0xc7a   :  { %2498 = vmatpush3.msra.mxu0 %v3055_v42 }
 0xc7b   :  { %2499 = vmatprep.subr.mxu0 %v2785_v0 }
 0xc7c   :  { %2500 = vmatpush3.msra.mxu0 %v3060_v43 }
 0xc7d   :  { %2501 = vmatprep.subr.mxu0 %v2785_v0 }
 0xc7e   :  { %2502 = vmatpush3.msra.mxu0 %v3067_v44 }
 0xc7f   :  { %2552 = vmatprep.subr.mxu0 %v2785_v0 }
 0xd1f   :  { %v1467_v15 = vpop.f32.mrf.mxu0 }
 0xd20   :  { %v1474_v18 = vmax.f32 %v1467_v15, 0.0 }
 0xd21   :  { %v2449_v16 = vpop.f32.mrf.mxu0 }
 0xd23   :  { %v1470_v17 = vpop.f32.mrf.mxu0 }
 0xd24   :  { %v1475_v19 = vmax.f32 %v1470_v17, 0.0 }
 0xd25   :  { %v2450_v20 = vpop.f32.mrf.mxu0 }
 0xd26   :  { %v1476_v21 = vpack.c.bf16 %v1475_v19, %v1474_v18 }
 0xd28   :  { %2468 = vmatmul.mubr.bf16.vlgmr.msra.gmra.mxu1 %v1476_v21 }
 0xd29   :  { %2507 = vmatpush3.msra.mxu1 %v3075_v45  ;;  %2514 = vmatprep.mubr.msk.f32.mxu1 %vm2786_vm0, %v2785_v0 }
 0xd2a   :  { %2508 = vmatprep.subr.mxu1 %v2785_v0 }
 0xd2b   :  { %2509 = vmatpush3.msra.mxu1 %v3080_v46 }
 0xd2c   :  { %2510 = vmatprep.subr.mxu1 %v2785_v0 }
 0xd2d   :  { %2511 = vmatpush3.msra.mxu1 %v3130_v58 }
 0xd2e   :  { %2512 = vmatprep.subr.mxu1 %v2785_v0 }
 0xd2f   :  { %2513 = vmatpush3.msra.mxu1 %v3137_v59 }
 0xd30   :  { %2517 = vmatprep.subr.mxu1 %v2785_v0 }
 0xde8   :  { %v1559_v28 = vpop.f32.mrf.mxu1 }
 0xdea   :  { %v2469_v29 = vpop.f32.mrf.mxu1 }
 0xdec   :  { %v1562_v30 = vpop.f32.mrf.mxu1 }
 0xded   :  { %v1566_v31 = vadd.f32 %v1562_v30, %v1559_v28 }
 0xdee   :  { %v2470_v32 = vpop.f32.mrf.mxu1 }
 0xdef   :  { %v1567_v33 = vrot.slane %v1566_v31, 4 }
 0xdf1   :  { %v1568_v34 = vadd.f32 %v1567_v33, %v1566_v31 }
 0xdf3   :  { %v1569_v47 = vrot.slane %v1568_v34, 2 }
 0xdf5   :  { %v1570_v48 = vadd.f32 %v1569_v47, %v1568_v34 }
 0xdf7   :  { %v1571_v53 = vrot.slane %v1570_v48, 1 }
 0xdf9   :  { %v1572_v54 = vadd.f32 %v1571_v53, %v1570_v48 }
 0xdfb   :  { %2504 = vmatmul.mubr.f32.vlgmr.msra.gmra.mxu0 %v1572_v54 }
 0xdfc   :  { %2553 = vmatpush3.msra.mxu0 %v3075_v45  ;;  %2560 = vmatprep.mubr.msk.f32.mxu0 %vm2786_vm0, %v2785_v0 }
 0xdfd   :  { %2554 = vmatprep.subr.mxu0 %v2785_v0 }
 0xdfe   :  { %2555 = vmatpush3.msra.mxu0 %v3080_v46  ;;  %v1338_v46 = vld [vmem:[%s3473_s14] sm:$0x1]  ;;  %s2745_s14 = scalar_lea.vmem %s1905_s13, 256 }
 0xdff   :  { %2556 = vmatprep.subr.mxu0 %v2785_v0  ;;  %p2746_p2 = scmp.ne.s32.totalorder %s1905_s13, %s2745_s14  ;;  %p2751_p4 = scmp.lt.s32.totalorder %s2745_s14, %s2745_s14 }
 0xe00   :  { %2557 = vmatpush3.msra.mxu0 %v3130_v58 }
 0xe01   :  { %2558 = vmatprep.subr.mxu0 %v2785_v0  ;;  %p2752_p5 = por %p2751_p4, %p2750_p3 }
 0xe02   :  { %2559 = vmatpush3.msra.mxu0 %v3137_v59 }
 0xe03   :  { %p2753_p6 = pnand %p2752_p5, %p2746_p2 }
 0xebb   :  { %v1639_v55 = vpop.f32.mrf.mxu0 }
 0xebc   :  { %v1643_v51 = vmul.f32 0.015625, %v1639_v55 }
 0xebd   :  { %v2505_v52 = vpop.f32.mrf.mxu0 }
 0xebe   :  { %2515 = vmatmul.mubr.msk.f32.vlgmr.msra.gmra.mxu1 %vm249_vm2, %v1643_v51 }
 0xebf   :  { %2518 = vmatpush3.msra.mxu1 %v2962_v22  ;;  %2549 = vmatprep.mubr.msk.f32.mxu1 %vm2786_vm0, %v2785_v0 }
 0xec0   :  { %2519 = vmatprep.subr.mxu1 %v2785_v0 }
 0xec1   :  { %2520 = vmatpush3.msra.mxu1 %v2967_v23 }
 0xec2   :  { %2521 = vmatprep.subr.mxu1 %v2785_v0 }
 0xec3   :  { %2522 = vmatpush3.msra.mxu1 %v2974_v24 }
 0xec4   :  { %2523 = vmatprep.subr.mxu1 %v2785_v0 }
 0xec5   :  { %2524 = vmatpush3.msra.mxu1 %v2981_v25 }
 0xec6   :  { %2525 = vmatprep.subr.mxu1 %v2785_v0 }
 0xec7   :  { %2526 = vmatpush3.msra.mxu1 %v2988_v26 }
 0xec8   :  { %2527 = vmatprep.subr.mxu1 %v2785_v0 }
 0xec9   :  { %2528 = vmatpush3.msra.mxu1 %v2995_v27 }
 0xeca   :  { %2529 = vmatprep.subr.mxu1 %v2785_v0 }
 0xecb   :  { %2530 = vmatpush3.msra.mxu1 %v3006_v35 }
 0xecc   :  { %2531 = vmatprep.subr.mxu1 %v2785_v0 }
 0xecd   :  { %2532 = vmatpush3.msra.mxu1 %v3013_v36 }
 0xece   :  { %2533 = vmatprep.subr.mxu1 %v2785_v0 }
 0xecf   :  { %2534 = vmatpush3.msra.mxu1 %v3020_v37 }
 0xed0   :  { %2535 = vmatprep.subr.mxu1 %v2785_v0 }
 0xed1   :  { %2536 = vmatpush3.msra.mxu1 %v3027_v38 }
 0xed2   :  { %2537 = vmatprep.subr.mxu1 %v2785_v0 }
 0xed3   :  { %2538 = vmatpush3.msra.mxu1 %v3034_v39 }
 0xed4   :  { %2539 = vmatprep.subr.mxu1 %v2785_v0 }
 0xed5   :  { %2540 = vmatpush3.msra.mxu1 %v3041_v40 }
 0xed6   :  { %2541 = vmatprep.subr.mxu1 %v2785_v0 }
 0xed7   :  { %2542 = vmatpush3.msra.mxu1 %v3048_v41 }
 0xed8   :  { %2543 = vmatprep.subr.mxu1 %v2785_v0 }
 0xed9   :  { %2544 = vmatpush3.msra.mxu1 %v3055_v42 }
 0xeda   :  { %2545 = vmatprep.subr.mxu1 %v2785_v0 }
 0xedb   :  { %2546 = vmatpush3.msra.mxu1 %v3060_v43 }
 0xedc   :  { %2547 = vmatprep.subr.mxu1 %v2785_v0 }
 0xedd   :  { %2548 = vmatpush3.msra.mxu1 %v3067_v44 }
 0xf7e   :  { %v1713_v22 = vpop.f32.mrf.mxu1 }
 0xf7f   :  { %v1720_v23 = vrot.slane %v1713_v22, %v3152_v2 }
 0xf80   :  { %v2516_v24 = vpop.f32.mrf.mxu1 }
 0xf81   :  { %v1721_v25 = vsub.f32 %v1559_v28, %v1720_v23  ;;  %v1722_v26 = vsub.f32 %v1562_v30, %v1720_v23 }
 0xf83   :  { %v1723_v27 = vmul.f32 %v1721_v25, %v1721_v25  ;;  %v1724_v35 = vmul.f32 %v1722_v26, %v1722_v26 }
 0xf85   :  { %v1725_v36 = vadd.f32 %v1724_v35, %v1723_v27 }
 0xf87   :  { %v1726_v37 = vrot.slane %v1725_v36, 4 }
 0xf89   :  { %v1727_v38 = vadd.f32 %v1726_v37, %v1725_v36 }
 0xf8b   :  { %v1728_v39 = vrot.slane %v1727_v38, 2 }
 0xf8d   :  { %v1729_v40 = vadd.f32 %v1728_v39, %v1727_v38 }
 0xf8f   :  { %v1730_v41 = vrot.slane %v1729_v40, 1 }
 0xf91   :  { %v1731_v42 = vadd.f32 %v1730_v41, %v1729_v40 }
 0xf93   :  { %2550 = vmatmul.mubr.f32.vlgmr.msra.gmra.mxu1 %v1731_v42 }
0x1053   :  { %v1798_v43 = vpop.f32.mrf.mxu1 }
0x1054   :  { %v1802_v0 = vmul.f32 0.015625, %v1798_v43 }
0x1055   :  { %v2551_v45 = vpop.f32.mrf.mxu1 }
0x1056   :  { %v1803_v44 = vadd.f32 1e-05, %v1802_v0 }
0x1058   :  { %2623 = vrsqrt.f32 %v1803_v44 }
0x1065   :  { %v2624_v58 = vpop.eup %2623 }
0x1066   :  { %v1805_v59 = vmul.f32 %v2624_v58, %v1338_v46 }
0x1068   :  { %2561 = vmatmul.mubr.msk.f32.vlgmr.msra.gmra.mxu0 %vm249_vm2, %v1805_v59 }
0x1128   :  { %v1875_v56 = vpop.f32.mrf.mxu0 }
0x1129   :  { %v1882_v4 = vrot.slane %v1875_v56, %v3152_v2 }
0x112a   :  { %v2562_v60 = vpop.f32.mrf.mxu0 }
0x112b   :  { %v1883_v61 = vmul.f32 %v1882_v4, %v1721_v25  ;;  %v1884_v62 = vmul.f32 %v1882_v4, %v1722_v26 }
0x112d   :  { %v1891_v63 = vadd.f32 %v1974_v57, %v1883_v61  ;;  %v1892_v1 = vadd.f32 %v1974_v57, %v1884_v62 }
0x112f   :  { %v1893_v3 = vmax.f32 %v1891_v63, 0.0  ;;  %v1894_v5 = vmax.f32 %v1892_v1, 0.0 }
0x1131   :  { %v1895_v6 = vadd.f32 %v1893_v3, %v3325_v49  ;;  %v1896_v7 = vadd.f32 %v1894_v5, %v3328_v50 }
0x1133   :  { %1897 = vst [vmem:[#allocation13] sm:$0xff] %v1895_v6  ;;  %1898 = vst [vmem:[#allocation13 + $0x8] sm:$0xff] %v1896_v7 }
0x1134   :  { %2756 = shalt.err (!%p2753_p6)
}
0x1135   :  { %1910 = dma.vmem_to_hbm [thread:$0]  %s1905_s13, 256, %s3475_s16, [#allocation4], %s2780_s20, %s2780_s20, %s2781_s21  }
0x1136   :  { %2773 = dma.done.wait [#allocation4], 256  }
0x1137   :  { %2774 = vsyncadd [#allocation4], 4294967040 }
0x1138   :  { %1914 = vsyncpa [#allocation3], 1 }
0x1139   :  { %1915 = vsyncpa [#allocation6], 1 }
0x113a   :  { %1916 = vsyncpa [#allocation9], 1 }
0x113b   :  { %1917 = vsyncpa [#allocation12], 1 }
0x113c   :  { %1918 = vsyncpa [#allocation4], 1 }

</bundles_post_ra>
